<compile_context>
chip_gen: v5e
topology: v5e:2x2
jax: 0.10.0
libtpu: 0.0.40
codegen_flags: <defaults>
</compile_context>

<pallas_src>
import math
from functools import partial

import jax
import jax.numpy as jnp
from jax.experimental import pallas as pl
from jax.experimental.pallas import tpu as pltpu


def _gelu_tanh(x):
    # TODO(synk): PyTorch nn.GELU() default is the exact erf-based GELU; the
    # tanh approximation (max abs err ~3e-4) is used because erf lowering is
    # not guaranteed in Mosaic.
    c = 0.7978845608028654  # sqrt(2/pi)
    return 0.5 * x * (1.0 + jnp.tanh(c * (x + 0.044715 * x * x * x)))


# ----------------------------------------------------------------------------
# Fused kernel: fc1 -> depthwise 3x3 (zero pad) -> GELU -> fc2
# ----------------------------------------------------------------------------

def mlp_kernel(x_ref, w1_ref, b1_ref, wd_ref, bd_ref, w2_ref, b2_ref,
               o_ref, hp_ref, acc_ref, *, H, W):
    """One batch element, fully resident in VMEM.

    x_ref : (1, N, Cin), N = H*W          w1_ref: (Cin, Chid)  b1_ref: (1, Chid)
    wd_ref: (9, Chid) depthwise taps       bd_ref: (1, Chid)
    w2_ref: (Chid, Cout)                   b2_ref: (1, Cout)
    o_ref : (1, N, Cout)
    hp_ref : VMEM scratch (H+2, W+9, Chid) zero-bordered fc1 activation (halo)
    acc_ref: VMEM scratch (H, W, Chid)     depthwise-conv accumulator
    """
    N = H * W
    Chid = w1_ref.shape[1]
    PAD_L = 8            # sublane-aligned column offset of the interior image
    RPAD = PAD_L + W     # right-padding column index

    # ---- fc1: (N, Cin) @ (Cin, Chid) + b1  (MXU)
    h = jnp.dot(x_ref[0], w1_ref[...], preferred_element_type=jnp.float32)
    h = h + b1_ref[0]

    # Zero only the halo cells the conv actually reads (rows 0 and H+1, plus
    # columns PAD_L-1 and RPAD).  Re-done every grid step: a handful of stores,
    # and keeps each step independent of prior scratch state (megacore-safe
    # under a "parallel" batch axis).
    zrow = jnp.zeros((1, W + 9, Chid), jnp.float32)
    hp_ref[0:1, :, :] = zrow
    hp_ref[H + 1:H + 2, :, :] = zrow
    zcol = jnp.zeros((H + 2, 1, Chid), jnp.float32)
    hp_ref[:, PAD_L - 1:PAD_L, :] = zcol
    hp_ref[:, RPAD:RPAD + 1, :] = zcol

    # Interior write is sublane-aligned (column offset 8).
    hp_ref[1:H + 1, PAD_L:RPAD, :] = h.reshape(H, W, Chid)

    # ---- depthwise 3x3, stride 1, zero padding: 3 row-passes of 3 fused taps.
    # dy-slices index the outer dim (free); dx-slices are +-1 sublane shifts.
    for dy in range(3):
        row = (hp_ref[dy:dy + H, PAD_L - 1:PAD_L - 1 + W, :] * wd_ref[3 * dy]
               + hp_ref[dy:dy + H, PAD_L:PAD_L + W, :] * wd_ref[3 * dy + 1]
               + hp_ref[dy:dy + H, PAD_L + 1:PAD_L + 1 + W, :] * wd_ref[3 * dy + 2])
        if dy == 0:
            acc_ref[...] = row + bd_ref[0]     # fold in depthwise bias here
        else:
            acc_ref[...] += row

    g = _gelu_tanh(acc_ref[...])

    # Dropout(p=0.0) is the identity — nothing to do.

    # ---- fc2: (N, Chid) @ (Chid, Cout) + b2  (MXU)
    y = jnp.dot(g.reshape(N, Chid), w2_ref[...],
                preferred_element_type=jnp.float32) + b2_ref[0]
    o_ref[0] = y.astype(o_ref.dtype)


def mlp_forward(params, x, H, W):
    """x: (B, N, Cin) token-major (PyTorch (B, N, C)) -> (B, N, Cout)."""
    B, N, Cin = x.shape
    assert N == H * W
    w1, b1 = params["w1"], params["b1"]
    wd, bd = params["wd"], params["bd"]
    w2, b2 = params["w2"], params["b2"]
    Chid = w1.shape[1]
    Cout = w2.shape[1]

    return pl.pallas_call(
        partial(mlp_kernel, H=H, W=W),
        out_shape=jax.ShapeDtypeStruct((B, N, Cout), jnp.float32),
        grid=(B,),
        in_specs=[
            pl.BlockSpec((1, N, Cin), lambda b: (b, 0, 0)),
            pl.BlockSpec((Cin, Chid), lambda b: (0, 0)),
            pl.BlockSpec((1, Chid), lambda b: (0, 0)),
            pl.BlockSpec((9, Chid), lambda b: (0, 0)),
            pl.BlockSpec((1, Chid), lambda b: (0, 0)),
            pl.BlockSpec((Chid, Cout), lambda b: (0, 0)),
            pl.BlockSpec((1, Cout), lambda b: (0, 0)),
        ],
        out_specs=pl.BlockSpec((1, N, Cout), lambda b: (b, 0, 0)),
        scratch_shapes=[
            pltpu.VMEM((H + 2, W + 9, Chid), jnp.float32),  # halo scratch
            pltpu.VMEM((H, W, Chid), jnp.float32),          # conv accumulator
        ],
        # grid=(B,) marked parallel: maps onto v7x's two TensorCores; on
        # single-TC v5e/v6e it only costs ~0.35us of per-step overhead.
        compiler_params=pltpu.CompilerParams(
            dimension_semantics=("parallel",)),
    )(x, w1, b1, wd, bd, w2, b2)


# ----------------------------------------------------------------------------
# Parameter init (matches Mlp._init_weights) and pure-JAX reference
# ----------------------------------------------------------------------------

def init_mlp_params(key, in_features, hidden_features, out_features):
    k1, k2, k3 = jax.random.split(key, 3)
    trunc = lambda k, shape, std: std * jnp.clip(
        jax.random.normal(k, shape, jnp.float32), -2.0, 2.0)
    # nn.Linear: trunc_normal(std=0.02) weights, zero bias; stored as W^T (in,out)
    w1 = trunc(k1, (in_features, hidden_features), 0.02)
    b1 = jnp.zeros((1, hidden_features), jnp.float32)
    # depthwise Conv2d(hidden, hidden, 3, groups=hidden): fan_out = 9
    w_dw = math.sqrt(2.0 / 9.0) * jax.random.normal(
        k2, (hidden_features, 3, 3), jnp.float32)
    wd = jnp.transpose(w_dw, (1, 2, 0)).reshape(9, hidden_features)  # tap-major
    bd = jnp.zeros((1, hidden_features), jnp.float32)
    w2 = trunc(k3, (hidden_features, out_features), 0.02)
    b2 = jnp.zeros((1, out_features), jnp.float32)
    return {"w1": w1, "b1": b1, "wd": wd, "bd": bd, "w2": w2, "b2": b2}


def mlp_reference(params, x, H, W):
    B, N, _ = x.shape
    h = x @ params["w1"] + params["b1"][0]                    # (B, N, Chid)
    Chid = h.shape[-1]
    himg = h.reshape(B, H, W, Chid)
    hp = jnp.pad(himg, ((0, 0), (1, 1), (1, 1), (0, 0)))
    acc = jnp.zeros_like(himg)
    for k in range(9):
        dy, dx = divmod(k, 3)
        acc = acc + hp[:, dy:dy + H, dx:dx + W, :] * params["wd"][k]
    g = _gelu_tanh(acc + params["bd"][0])
    return g.reshape(B, N, Chid) @ params["w2"] + params["b2"][0]


# ----------------------------------------------------------------------------
# Main
# ----------------------------------------------------------------------------

if __name__ == "__main__":
    key = jax.random.PRNGKey(0)
    kx, kp = jax.random.split(key)

    B, H, W = 2, 16, 16
    in_features, hidden_features, out_features = 64, 128, 64
    N = H * W

    x = jax.random.normal(kx, (B, N, in_features), jnp.float32)
    params = init_mlp_params(kp, in_features, hidden_features, out_features)

    out = mlp_forward(params, x, H, W)
    out = jax.block_until_ready(out)

    assert out.shape == (B, N, out_features), out.shape
    assert bool(jnp.all(jnp.isfinite(out)))

    ref = mlp_reference(params, x, H, W)
    assert bool(jnp.allclose(out, ref, atol=2e-3, rtol=2e-2))

    print("KERNEL_OK")
</pallas_src>

<mosaic_0001>
module attributes {stable_mosaic.version = 11 : i64} {
  func.func @mlp_kernel(%arg0: i32, %arg1: memref<1x256x64xf32, #tpu.memory_space<vmem>>, %arg2: memref<64x128xf32, #tpu.memory_space<vmem>>, %arg3: memref<1x128xf32, #tpu.memory_space<vmem>>, %arg4: memref<9x128xf32, #tpu.memory_space<vmem>>, %arg5: memref<1x128xf32, #tpu.memory_space<vmem>>, %arg6: memref<128x64xf32, #tpu.memory_space<vmem>>, %arg7: memref<1x64xf32, #tpu.memory_space<vmem>>, %arg8: memref<1x256x64xf32, #tpu.memory_space<vmem>>, %arg9: memref<18x25x128xf32, #tpu.memory_space<vmem>>, %arg10: memref<16x16x128xf32, #tpu.memory_space<vmem>>) attributes {dimension_semantics = [#tpu.dimension_semantics<parallel>], iteration_bounds = array<i64: 2>, scalar_prefetch = 0 : i64, scratch_operands = 2 : i64, tpu.core_type = #tpu.core_type<tc>, window_params = [{transform_indices = @transform_0, window_bounds = array<i64: 1, 256, 64>}, {pipeline_mode = #tpu.pipeline_mode<synchronous>, transform_indices = @transform_1, window_bounds = array<i64: 64, 128>}, {pipeline_mode = #tpu.pipeline_mode<synchronous>, transform_indices = @transform_2, window_bounds = array<i64: 1, 128>}, {pipeline_mode = #tpu.pipeline_mode<synchronous>, transform_indices = @transform_3, window_bounds = array<i64: 9, 128>}, {pipeline_mode = #tpu.pipeline_mode<synchronous>, transform_indices = @transform_4, window_bounds = array<i64: 1, 128>}, {pipeline_mode = #tpu.pipeline_mode<synchronous>, transform_indices = @transform_5, window_bounds = array<i64: 128, 64>}, {pipeline_mode = #tpu.pipeline_mode<synchronous>, transform_indices = @transform_6, window_bounds = array<i64: 1, 64>}, {transform_indices = @transform_7, window_bounds = array<i64: 1, 256, 64>}]} {
    %c0 = arith.constant 0 : index
    %c0_0 = arith.constant 0 : index
    %c0_1 = arith.constant 0 : index
    %0 = vector.load %arg1[%c0, %c0_0, %c0_1] : memref<1x256x64xf32, #tpu.memory_space<vmem>>, vector<1x256x64xf32>
    %1 = vector.shape_cast %0 : vector<1x256x64xf32> to vector<256x64xf32>
    %c0_2 = arith.constant 0 : index
    %c0_3 = arith.constant 0 : index
    %2 = vector.load %arg2[%c0_2, %c0_3] : memref<64x128xf32, #tpu.memory_space<vmem>>, vector<64x128xf32>
    %cst = arith.constant dense<0.000000e+00> : vector<256x128xf32>
    %3 = tpu.matmul %1, %2, %cst {dimension_numbers = #tpu.dot_dimension_numbers<[1], [0], [0], [1], [0, 0, 1, 1], [], []>} : vector<256x64xf32>, vector<64x128xf32>, vector<256x128xf32> -> vector<256x128xf32>
    %c0_4 = arith.constant 0 : index
    %c0_5 = arith.constant 0 : index
    %4 = vector.load %arg3[%c0_4, %c0_5] : memref<1x128xf32, #tpu.memory_space<vmem>>, vector<1x128xf32>
    %5 = vector.shape_cast %4 : vector<1x128xf32> to vector<128xf32>
    %6 = vector.shape_cast %5 : vector<128xf32> to vector<1x128xf32>
    %7 = vector.broadcast %6 : vector<1x128xf32> to vector<256x128xf32>
    %8 = arith.addf %3, %7 : vector<256x128xf32>
    %cst_6 = arith.constant 0.000000e+00 : f32
    %9 = vector.broadcast %cst_6 : f32 to vector<1x25x128xf32>
    %c0_7 = arith.constant 0 : index
    %c0_8 = arith.constant 0 : index
    %c0_9 = arith.constant 0 : index
    %10 = vector.load %arg9[%c0_7, %c0_8, %c0_9] : memref<18x25x128xf32, #tpu.memory_space<vmem>>, vector<1x25x128xf32>
    tpu.vector_store %arg9[%c0_7, %c0_8, %c0_9], %9 {strides = array<i32>} : memref<18x25x128xf32, #tpu.memory_space<vmem>>, vector<1x25x128xf32>,
    %c17 = arith.constant 17 : index
    %c0_10 = arith.constant 0 : index
    %c0_11 = arith.constant 0 : index
    %11 = vector.load %arg9[%c17, %c0_10, %c0_11] : memref<18x25x128xf32, #tpu.memory_space<vmem>>, vector<1x25x128xf32>
    tpu.vector_store %arg9[%c17, %c0_10, %c0_11], %9 {strides = array<i32>} : memref<18x25x128xf32, #tpu.memory_space<vmem>>, vector<1x25x128xf32>,
    %cst_12 = arith.constant 0.000000e+00 : f32
    %12 = vector.broadcast %cst_12 : f32 to vector<18x1x128xf32>
    %c0_13 = arith.constant 0 : index
    %c7 = arith.constant 7 : index
    %c0_14 = arith.constant 0 : index
    %13 = vector.load %arg9[%c0_13, %c7, %c0_14] : memref<18x25x128xf32, #tpu.memory_space<vmem>>, vector<18x1x128xf32>
    tpu.vector_store %arg9[%c0_13, %c7, %c0_14], %12 {strides = array<i32>} : memref<18x25x128xf32, #tpu.memory_space<vmem>>, vector<18x1x128xf32>,
    %c0_15 = arith.constant 0 : index
    %c24 = arith.constant 24 : index
    %c0_16 = arith.constant 0 : index
    %14 = vector.load %arg9[%c0_15, %c24, %c0_16] : memref<18x25x128xf32, #tpu.memory_space<vmem>>, vector<18x1x128xf32>
    tpu.vector_store %arg9[%c0_15, %c24, %c0_16], %12 {strides = array<i32>} : memref<18x25x128xf32, #tpu.memory_space<vmem>>, vector<18x1x128xf32>,
    %15 = vector.shape_cast %8 : vector<256x128xf32> to vector<16x16x128xf32>
    %c1 = arith.constant 1 : index
    %c8 = arith.constant 8 : index
    %c0_17 = arith.constant 0 : index
    %16 = vector.load %arg9[%c1, %c8, %c0_17] : memref<18x25x128xf32, #tpu.memory_space<vmem>>, vector<16x16x128xf32>
    tpu.vector_store %arg9[%c1, %c8, %c0_17], %15 {strides = array<i32>} : memref<18x25x128xf32, #tpu.memory_space<vmem>>, vector<16x16x128xf32>,
    %c0_18 = arith.constant 0 : index
    %c7_19 = arith.constant 7 : index
    %c0_20 = arith.constant 0 : index
    %17 = vector.load %arg9[%c0_18, %c7_19, %c0_20] : memref<18x25x128xf32, #tpu.memory_space<vmem>>, vector<16x16x128xf32>
    %c0_21 = arith.constant 0 : index
    %c0_22 = arith.constant 0 : index
    %18 = vector.load %arg4[%c0_21, %c0_22] : memref<9x128xf32, #tpu.memory_space<vmem>>, vector<1x128xf32>
    %19 = vector.shape_cast %18 : vector<1x128xf32> to vector<128xf32>
    %20 = vector.shape_cast %19 : vector<128xf32> to vector<1x1x128xf32>
    %21 = vector.broadcast %20 : vector<1x1x128xf32> to vector<16x16x128xf32>
    %22 = arith.mulf %17, %21 : vector<16x16x128xf32>
    %c0_23 = arith.constant 0 : index
    %c8_24 = arith.constant 8 : index
    %c0_25 = arith.constant 0 : index
    %23 = vector.load %arg9[%c0_23, %c8_24, %c0_25] : memref<18x25x128xf32, #tpu.memory_space<vmem>>, vector<16x16x128xf32>
    %c1_26 = arith.constant 1 : index
    %c0_27 = arith.constant 0 : index
    %24 = vector.load %arg4[%c1_26, %c0_27] : memref<9x128xf32, #tpu.memory_space<vmem>>, vector<1x128xf32>
    %25 = vector.shape_cast %24 : vector<1x128xf32> to vector<128xf32>
    %26 = vector.shape_cast %25 : vector<128xf32> to vector<1x1x128xf32>
    %27 = vector.broadcast %26 : vector<1x1x128xf32> to vector<16x16x128xf32>
    %28 = arith.mulf %23, %27 : vector<16x16x128xf32>
    %29 = arith.addf %22, %28 : vector<16x16x128xf32>
    %c0_28 = arith.constant 0 : index
    %c9 = arith.constant 9 : index
    %c0_29 = arith.constant 0 : index
    %30 = vector.load %arg9[%c0_28, %c9, %c0_29] : memref<18x25x128xf32, #tpu.memory_space<vmem>>, vector<16x16x128xf32>
    %c2 = arith.constant 2 : index
    %c0_30 = arith.constant 0 : index
    %31 = vector.load %arg4[%c2, %c0_30] : memref<9x128xf32, #tpu.memory_space<vmem>>, vector<1x128xf32>
    %32 = vector.shape_cast %31 : vector<1x128xf32> to vector<128xf32>
    %33 = vector.shape_cast %32 : vector<128xf32> to vector<1x1x128xf32>
    %34 = vector.broadcast %33 : vector<1x1x128xf32> to vector<16x16x128xf32>
    %35 = arith.mulf %30, %34 : vector<16x16x128xf32>
    %36 = arith.addf %29, %35 : vector<16x16x128xf32>
    %c0_31 = arith.constant 0 : index
    %c0_32 = arith.constant 0 : index
    %37 = vector.load %arg5[%c0_31, %c0_32] : memref<1x128xf32, #tpu.memory_space<vmem>>, vector<1x128xf32>
    %38 = vector.shape_cast %37 : vector<1x128xf32> to vector<128xf32>
    %39 = vector.shape_cast %38 : vector<128xf32> to vector<1x1x128xf32>
    %40 = vector.broadcast %39 : vector<1x1x128xf32> to vector<16x16x128xf32>
    %41 = arith.addf %36, %40 : vector<16x16x128xf32>
    %c0_33 = arith.constant 0 : index
    %c0_34 = arith.constant 0 : index
    %c0_35 = arith.constant 0 : index
    %42 = vector.load %arg10[%c0_33, %c0_34, %c0_35] : memref<16x16x128xf32, #tpu.memory_space<vmem>>, vector<16x16x128xf32>
    tpu.vector_store %arg10[%c0_33, %c0_34, %c0_35], %41 {strides = array<i32>} : memref<16x16x128xf32, #tpu.memory_space<vmem>>, vector<16x16x128xf32>,
    %c1_36 = arith.constant 1 : index
    %c7_37 = arith.constant 7 : index
    %c0_38 = arith.constant 0 : index
    %43 = vector.load %arg9[%c1_36, %c7_37, %c0_38] : memref<18x25x128xf32, #tpu.memory_space<vmem>>, vector<16x16x128xf32>
    %c3 = arith.constant 3 : index
    %c0_39 = arith.constant 0 : index
    %44 = vector.load %arg4[%c3, %c0_39] : memref<9x128xf32, #tpu.memory_space<vmem>>, vector<1x128xf32>
    %45 = vector.shape_cast %44 : vector<1x128xf32> to vector<128xf32>
    %46 = vector.shape_cast %45 : vector<128xf32> to vector<1x1x128xf32>
    %47 = vector.broadcast %46 : vector<1x1x128xf32> to vector<16x16x128xf32>
    %48 = arith.mulf %43, %47 : vector<16x16x128xf32>
    %c1_40 = arith.constant 1 : index
    %c8_41 = arith.constant 8 : index
    %c0_42 = arith.constant 0 : index
    %49 = vector.load %arg9[%c1_40, %c8_41, %c0_42] : memref<18x25x128xf32, #tpu.memory_space<vmem>>, vector<16x16x128xf32>
    %c4 = arith.constant 4 : index
    %c0_43 = arith.constant 0 : index
    %50 = vector.load %arg4[%c4, %c0_43] : memref<9x128xf32, #tpu.memory_space<vmem>>, vector<1x128xf32>
    %51 = vector.shape_cast %50 : vector<1x128xf32> to vector<128xf32>
    %52 = vector.shape_cast %51 : vector<128xf32> to vector<1x1x128xf32>
    %53 = vector.broadcast %52 : vector<1x1x128xf32> to vector<16x16x128xf32>
    %54 = arith.mulf %49, %53 : vector<16x16x128xf32>
    %55 = arith.addf %48, %54 : vector<16x16x128xf32>
    %c1_44 = arith.constant 1 : index
    %c9_45 = arith.constant 9 : index
    %c0_46 = arith.constant 0 : index
    %56 = vector.load %arg9[%c1_44, %c9_45, %c0_46] : memref<18x25x128xf32, #tpu.memory_space<vmem>>, vector<16x16x128xf32>
    %c5 = arith.constant 5 : index
    %c0_47 = arith.constant 0 : index
    %57 = vector.load %arg4[%c5, %c0_47] : memref<9x128xf32, #tpu.memory_space<vmem>>, vector<1x128xf32>
    %58 = vector.shape_cast %57 : vector<1x128xf32> to vector<128xf32>
    %59 = vector.shape_cast %58 : vector<128xf32> to vector<1x1x128xf32>
    %60 = vector.broadcast %59 : vector<1x1x128xf32> to vector<16x16x128xf32>
    %61 = arith.mulf %56, %60 : vector<16x16x128xf32>
    %62 = arith.addf %55, %61 : vector<16x16x128xf32>
    %c0_48 = arith.constant 0 : index
    %c0_49 = arith.constant 0 : index
    %c0_50 = arith.constant 0 : index
    %63 = vector.load %arg10[%c0_48, %c0_49, %c0_50] : memref<16x16x128xf32, #tpu.memory_space<vmem>>, vector<16x16x128xf32>
    %64 = arith.addf %63, %62 : vector<16x16x128xf32>
    %c0_51 = arith.constant 0 : index
    %c0_52 = arith.constant 0 : index
    %c0_53 = arith.constant 0 : index
    %65 = vector.load %arg10[%c0_51, %c0_52, %c0_53] : memref<16x16x128xf32, #tpu.memory_space<vmem>>, vector<16x16x128xf32>
    tpu.vector_store %arg10[%c0_51, %c0_52, %c0_53], %64 {strides = array<i32>} : memref<16x16x128xf32, #tpu.memory_space<vmem>>, vector<16x16x128xf32>,
    %c2_54 = arith.constant 2 : index
    %c7_55 = arith.constant 7 : index
    %c0_56 = arith.constant 0 : index
    %66 = vector.load %arg9[%c2_54, %c7_55, %c0_56] : memref<18x25x128xf32, #tpu.memory_space<vmem>>, vector<16x16x128xf32>
    %c6 = arith.constant 6 : index
    %c0_57 = arith.constant 0 : index
    %67 = vector.load %arg4[%c6, %c0_57] : memref<9x128xf32, #tpu.memory_space<vmem>>, vector<1x128xf32>
    %68 = vector.shape_cast %67 : vector<1x128xf32> to vector<128xf32>
    %69 = vector.shape_cast %68 : vector<128xf32> to vector<1x1x128xf32>
    %70 = vector.broadcast %69 : vector<1x1x128xf32> to vector<16x16x128xf32>
    %71 = arith.mulf %66, %70 : vector<16x16x128xf32>
    %c2_58 = arith.constant 2 : index
    %c8_59 = arith.constant 8 : index
    %c0_60 = arith.constant 0 : index
    %72 = vector.load %arg9[%c2_58, %c8_59, %c0_60] : memref<18x25x128xf32, #tpu.memory_space<vmem>>, vector<16x16x128xf32>
    %c7_61 = arith.constant 7 : index
    %c0_62 = arith.constant 0 : index
    %73 = vector.load %arg4[%c7_61, %c0_62] : memref<9x128xf32, #tpu.memory_space<vmem>>, vector<1x128xf32>
    %74 = vector.shape_cast %73 : vector<1x128xf32> to vector<128xf32>
    %75 = vector.shape_cast %74 : vector<128xf32> to vector<1x1x128xf32>
    %76 = vector.broadcast %75 : vector<1x1x128xf32> to vector<16x16x128xf32>
    %77 = arith.mulf %72, %76 : vector<16x16x128xf32>
    %78 = arith.addf %71, %77 : vector<16x16x128xf32>
    %c2_63 = arith.constant 2 : index
    %c9_64 = arith.constant 9 : index
    %c0_65 = arith.constant 0 : index
    %79 = vector.load %arg9[%c2_63, %c9_64, %c0_65] : memref<18x25x128xf32, #tpu.memory_space<vmem>>, vector<16x16x128xf32>
    %c8_66 = arith.constant 8 : index
    %c0_67 = arith.constant 0 : index
    %80 = vector.load %arg4[%c8_66, %c0_67] : memref<9x128xf32, #tpu.memory_space<vmem>>, vector<1x128xf32>
    %81 = vector.shape_cast %80 : vector<1x128xf32> to vector<128xf32>
    %82 = vector.shape_cast %81 : vector<128xf32> to vector<1x1x128xf32>
    %83 = vector.broadcast %82 : vector<1x1x128xf32> to vector<16x16x128xf32>
    %84 = arith.mulf %79, %83 : vector<16x16x128xf32>
    %85 = arith.addf %78, %84 : vector<16x16x128xf32>
    %c0_68 = arith.constant 0 : index
    %c0_69 = arith.constant 0 : index
    %c0_70 = arith.constant 0 : index
    %86 = vector.load %arg10[%c0_68, %c0_69, %c0_70] : memref<16x16x128xf32, #tpu.memory_space<vmem>>, vector<16x16x128xf32>
    %87 = arith.addf %86, %85 : vector<16x16x128xf32>
    %c0_71 = arith.constant 0 : index
    %c0_72 = arith.constant 0 : index
    %c0_73 = arith.constant 0 : index
    %88 = vector.load %arg10[%c0_71, %c0_72, %c0_73] : memref<16x16x128xf32, #tpu.memory_space<vmem>>, vector<16x16x128xf32>
    tpu.vector_store %arg10[%c0_71, %c0_72, %c0_73], %87 {strides = array<i32>} : memref<16x16x128xf32, #tpu.memory_space<vmem>>, vector<16x16x128xf32>,
    %c0_74 = arith.constant 0 : index
    %c0_75 = arith.constant 0 : index
    %c0_76 = arith.constant 0 : index
    %89 = vector.load %arg10[%c0_74, %c0_75, %c0_76] : memref<16x16x128xf32, #tpu.memory_space<vmem>>, vector<16x16x128xf32>
    %cst_77 = arith.constant 5.000000e-01 : f32
    %90 = vector.broadcast %cst_77 : f32 to vector<16x16x128xf32>
    %91 = arith.mulf %90, %89 : vector<16x16x128xf32>
    %cst_78 = arith.constant 4.471500e-02 : f32
    %92 = vector.broadcast %cst_78 : f32 to vector<16x16x128xf32>
    %93 = arith.mulf %92, %89 : vector<16x16x128xf32>
    %94 = arith.mulf %93, %89 : vector<16x16x128xf32>
    %95 = arith.mulf %94, %89 : vector<16x16x128xf32>
    %96 = arith.addf %89, %95 : vector<16x16x128xf32>
    %cst_79 = arith.constant 0.797884583 : f32
    %97 = vector.broadcast %cst_79 : f32 to vector<16x16x128xf32>
    %98 = arith.mulf %97, %96 : vector<16x16x128xf32>
    %99 = math.tanh %98 : vector<16x16x128xf32>
    %cst_80 = arith.constant 1.000000e+00 : f32
    %100 = vector.broadcast %cst_80 : f32 to vector<16x16x128xf32>
    %101 = arith.addf %100, %99 : vector<16x16x128xf32>
    %102 = arith.mulf %91, %101 : vector<16x16x128xf32>
    %103 = vector.shape_cast %102 : vector<16x16x128xf32> to vector<256x128xf32>
    %c0_81 = arith.constant 0 : index
    %c0_82 = arith.constant 0 : index
    %104 = vector.load %arg6[%c0_81, %c0_82] : memref<128x64xf32, #tpu.memory_space<vmem>>, vector<128x64xf32>
    %cst_83 = arith.constant dense<0.000000e+00> : vector<256x64xf32>
    %105 = tpu.matmul %103, %104, %cst_83 {dimension_numbers = #tpu.dot_dimension_numbers<[1], [0], [0], [1], [0, 0, 1, 1], [], []>} : vector<256x128xf32>, vector<128x64xf32>, vector<256x64xf32> -> vector<256x64xf32>
    %c0_84 = arith.constant 0 : index
    %c0_85 = arith.constant 0 : index
    %106 = vector.load %arg7[%c0_84, %c0_85] : memref<1x64xf32, #tpu.memory_space<vmem>>, vector<1x64xf32>
    %107 = vector.shape_cast %106 : vector<1x64xf32> to vector<64xf32>
    %108 = vector.shape_cast %107 : vector<64xf32> to vector<1x64xf32>
    %109 = vector.broadcast %108 : vector<1x64xf32> to vector<256x64xf32>
    %110 = arith.addf %105, %109 : vector<256x64xf32>
    %c0_86 = arith.constant 0 : index
    %c0_87 = arith.constant 0 : index
    %c0_88 = arith.constant 0 : index
    %111 = vector.load %arg8[%c0_86, %c0_87, %c0_88] : memref<1x256x64xf32, #tpu.memory_space<vmem>>, vector<1x256x64xf32>
    %112 = vector.shape_cast %111 : vector<1x256x64xf32> to vector<256x64xf32>
    %113 = vector.shape_cast %110 : vector<256x64xf32> to vector<1x256x64xf32>
    tpu.vector_store %arg8[%c0_86, %c0_87, %c0_88], %113 {strides = array<i32>} : memref<1x256x64xf32, #tpu.memory_space<vmem>>, vector<1x256x64xf32>,
    return
  }
  func.func @transform_0(%arg0: i32) -> (i32, i32, i32) {
    %c0_i32 = arith.constant 0 : i32
    %c0_i32_0 = arith.constant 0 : i32
    %c0_i32_1 = arith.constant 0 : i32
    return %arg0, %c0_i32, %c0_i32_0 : i32, i32, i32
  }
  func.func @transform_1(%arg0: i32) -> (i32, i32) {
    %c0_i32 = arith.constant 0 : i32
    %c0_i32_0 = arith.constant 0 : i32
    %c0_i32_1 = arith.constant 0 : i32
    return %c0_i32, %c0_i32_0 : i32, i32
  }
  func.func @transform_2(%arg0: i32) -> (i32, i32) {
    %c0_i32 = arith.constant 0 : i32
    %c0_i32_0 = arith.constant 0 : i32
    %c0_i32_1 = arith.constant 0 : i32
    return %c0_i32, %c0_i32_0 : i32, i32
  }
  func.func @transform_3(%arg0: i32) -> (i32, i32) {
    %c0_i32 = arith.constant 0 : i32
    %c0_i32_0 = arith.constant 0 : i32
    %c0_i32_1 = arith.constant 0 : i32
    return %c0_i32, %c0_i32_0 : i32, i32
  }
  func.func @transform_4(%arg0: i32) -> (i32, i32) {
    %c0_i32 = arith.constant 0 : i32
    %c0_i32_0 = arith.constant 0 : i32
    %c0_i32_1 = arith.constant 0 : i32
    return %c0_i32, %c0_i32_0 : i32, i32
  }
  func.func @transform_5(%arg0: i32) -> (i32, i32) {
    %c0_i32 = arith.constant 0 : i32
    %c0_i32_0 = arith.constant 0 : i32
    %c0_i32_1 = arith.constant 0 : i32
    return %c0_i32, %c0_i32_0 : i32, i32
  }
  func.func @transform_6(%arg0: i32) -> (i32, i32) {
    %c0_i32 = arith.constant 0 : i32
    %c0_i32_0 = arith.constant 0 : i32
    %c0_i32_1 = arith.constant 0 : i32
    return %c0_i32, %c0_i32_0 : i32, i32
  }
  func.func @transform_7(%arg0: i32) -> (i32, i32, i32) {
    %c0_i32 = arith.constant 0 : i32
    %c0_i32_0 = arith.constant 0 : i32
    %c0_i32_1 = arith.constant 0 : i32
    return %arg0, %c0_i32, %c0_i32_0 : i32, i32, i32
  }
}

</mosaic_0001>

<bundles_post_ra>
// kernel: tpu_custom_call.1
= control target key start
LH: loop header
LB: loop body
LE: loop exit
PB: predicated region body
PF: predicated region fallthrough
CT: control target
= control target key end

     0   :  { %s2439_s24 = smov 0   ;;  %s3828_s0 = inlined_call_operand.vmem [shape: f32[2,256,64], index: 0, kind: input, shape index: {}]   ;;  %s3829_s1 = inlined_call_operand.vmem [shape: f32[64,128], index: 1, kind: input, shape index: {}]   ;;  %s3830_s2 = inlined_call_operand.vmem [shape: f32[1,128], index: 2, kind: input, shape index: {}]   ;;  %s3831_s3 = inlined_call_operand.vmem [shape: f32[9,128], index: 3, kind: input, shape index: {}]   ;;  %s3832_s4 = inlined_call_operand.vmem [shape: f32[1,128], index: 4, kind: input, shape index: {}]   ;;  %s3833_s5 = inlined_call_operand.vmem [shape: f32[128,64], index: 5, kind: input, shape index: {}]   ;;  %s3834_s6 = inlined_call_operand.vmem [shape: f32[1,64], index: 6, kind: input, shape index: {}]   ;;  %s3835_s7 = inlined_call_operand.vmem [shape: f32[2,256,64], index: 7, kind: output, shape index: {}]  }
   0x1 LB: > { %s2198_s25 = sadd.s32 4294967295, %s2396_s24   ;;  %p2202_p0 = scmp.ge.s32.totalorder %s2396_s24, 1  ;;  %s2396_s24 = sphi %s2439_s24, %s17_s24  }
   0x2   : > { %p237_p1 = scmp.lt.s32.totalorder %s2396_s24, 3 }
   0x4   : > { %p238_p2 = pnand %p2202_p0, %p237_p1 }
   0x5   : > { %p269_p3 = scmp.lt.s32.totalorder (!%p238_p2), %s2198_s25, 1 }
   0x6   : > { %241 = sbr.rel (%p238_p2) target bundleno = 568 (0x238), region = 48 }
   0xb   : > { %v318_v0 = vld [vmem:[%s3829_s1 + $0x38] sm:$0xff]  ;;  %v317_v1 = vld [vmem:[%s3829_s1 + $0x30] sm:$0xff]  ;;  %v316_v2 = vld [vmem:[%s3829_s1 + $0x28] sm:$0xff]  ;;  %s3837_s25 = smov (!%p269_p3, %s2198_s25), 1  ;;  %vm323_vm0 = vcmask 523264   ;;  %v2398_v30 = vmov 0.0  }
   0xc   : > { %428 = vmatpush.msra.mxu0 %v318_v0  ;;  %2243 = vmatpush.msra.mxu3 %v318_v0  ;;  %v315_v3 = vld [vmem:[%s3829_s1 + $0x20] sm:$0xff]  ;;  %v314_v4 = vld [vmem:[%s3829_s1 + $0x18] sm:$0xff]  ;;  %s2241_s13 = sshll.u32 %s3837_s25, 8  ;;  %v313_v5 = vld [vmem:[%s3829_s1 + $0x10] sm:$0xff]  ;;  %533 = vst [vmem:[#allocation2] sm:$0xff] %v2398_v30 }
   0xd   : > { %v312_v6 = vld [vmem:[%s3829_s1 + $0x8] sm:$0xff]  ;;  %s2476_s20 = scalar_lea.vmem %s3828_s0, %s2241_s13  ;;  %v311_v7 = vld [vmem:[%s3829_s1] sm:$0xff]  ;;  %534 = vst [vmem:[#allocation2 + $0x8] sm:$0xff] %v2398_v30  ;;  %v1993_v37 = vld [vmem:[%s3833_s5 + $0x78] sm:$0xff]  ;;  %s3462_s26 = scalar_lea.vmem %s3835_s7, %s2241_s13 }
   0xe   : > { %429 = vmatpush.msra.mxu0 %v317_v1  ;;  %2244 = vmatpush.msra.mxu3 %v317_v1  ;;  %v279_v8 = vld [vmem:[%s2476_s20] sm:$0xff]  ;;  %v280_v9 = vld [vmem:[%s2476_s20 + $0x8] sm:$0xff]  ;;  %v281_v10 = vld [vmem:[%s2476_s20 + $0x10] sm:$0xff]  ;;  %535 = vst [vmem:[#allocation2 + $0x10] sm:$0xff] %v2398_v30 }
   0xf   : > { %v282_v11 = vld [vmem:[%s2476_s20 + $0x18] sm:$0xff]  ;;  %v296_v12 = vld [vmem:[%s2476_s20 + $0x88] sm:$0xff]  ;;  %v283_v13 = vld [vmem:[%s2476_s20 + $0x20] sm:$0xff]  ;;  %542 = vst [vmem:[#allocation2 + $0x7] sm:$0x1] %v2398_v30  ;;  %1998 = vmatpush.msra.mxu1 %v1993_v37  ;;  %2251 = vmatpush.msra.mxu2 %v1993_v37 }
  0x10   : > { %430 = vmatpush.msra.mxu0 %v316_v2  ;;  %2245 = vmatpush.msra.mxu3 %v316_v2  ;;  %v297_v14 = vld [vmem:[%s2476_s20 + $0x90] sm:$0xff]  ;;  %v284_v15 = vld [vmem:[%s2476_s20 + $0x28] sm:$0xff]  ;;  %v298_v16 = vld [vmem:[%s2476_s20 + $0x98] sm:$0xff]  ;;  %543 = vst [vmem:[#allocation2 + $0x27] sm:$0x1] %v2398_v30 }
  0x11   : > { %v285_v17 = vld [vmem:[%s2476_s20 + $0x30] sm:$0xff]  ;;  %v299_v18 = vld [vmem:[%s2476_s20 + $0xa0] sm:$0xff]  ;;  %v286_v19 = vld [vmem:[%s2476_s20 + $0x38] sm:$0xff]  ;;  %544 = vst [vmem:[#allocation2 + $0x47] sm:$0x1] %v2398_v30 }
  0x12   : > { %431 = vmatpush.msra.mxu0 %v315_v3  ;;  %2246 = vmatpush.msra.mxu3 %v315_v3  ;;  %v300_v20 = vld [vmem:[%s2476_s20 + $0xa8] sm:$0xff]  ;;  %v287_v21 = vld [vmem:[%s2476_s20 + $0x40] sm:$0xff]  ;;  %v301_v22 = vld [vmem:[%s2476_s20 + $0xb0] sm:$0xff]  ;;  %536 = vst [vmem:[#allocation2 + $0x18] sm:$0x1] %v2398_v30 }
  0x13   : > { %v288_v23 = vld [vmem:[%s2476_s20 + $0x48] sm:$0xff]  ;;  %v302_v24 = vld [vmem:[%s2476_s20 + $0xb8] sm:$0xff]  ;;  %v289_v25 = vld [vmem:[%s2476_s20 + $0x50] sm:$0xff]  ;;  %538 = vst [vmem:[#allocation2 + $0x220] sm:$0xff] %v2398_v30 }
  0x14   : > { %432 = vmatpush.msra.mxu0 %v314_v4  ;;  %2247 = vmatpush.msra.mxu3 %v314_v4  ;;  %v303_v26 = vld [vmem:[%s2476_s20 + $0xc0] sm:$0xff]  ;;  %v290_v27 = vld [vmem:[%s2476_s20 + $0x58] sm:$0xff]  ;;  %v304_v28 = vld [vmem:[%s2476_s20 + $0xc8] sm:$0xff]  ;;  %539 = vst [vmem:[#allocation2 + $0x228] sm:$0xff] %v2398_v30 }
  0x15   : > { %v291_v29 = vld [vmem:[%s2476_s20 + $0x60] sm:$0xff]  ;;  %v305_v31 = vld [vmem:[%s2476_s20 + $0xd0] sm:$0xff]  ;;  %v292_v32 = vld [vmem:[%s2476_s20 + $0x68] sm:$0xff]  ;;  %540 = vst [vmem:[#allocation2 + $0x230] sm:$0xff] %v2398_v30 }
  0x16   : > { %433 = vmatpush.msra.mxu0 %v313_v5  ;;  %2248 = vmatpush.msra.mxu3 %v313_v5  ;;  %541 = vst [vmem:[#allocation2 + $0x238] sm:$0x1] %v2398_v30  ;;  %v306_v33 = vld [vmem:[%s2476_s20 + $0xd8] sm:$0xff]  ;;  %v293_v34 = vld [vmem:[%s2476_s20 + $0x70] sm:$0xff]  ;;  %v307_v35 = vld [vmem:[%s2476_s20 + $0xe0] sm:$0xff] }
  0x17   : > { %545 = vst [vmem:[#allocation2 + $0x67] sm:$0x1] %v2398_v30  ;;  %v294_v36 = vld [vmem:[%s2476_s20 + $0x78] sm:$0xff]  ;;  %v2569_v38 = vld [vmem:[%s3830_s2] ss:$0 sm:$0xff]  ;;  %v308_v39 = vld [vmem:[%s2476_s20 + $0xe8] sm:$0xff] }
  0x18   : > { %434 = vmatpush.msra.mxu0 %v312_v6  ;;  %2249 = vmatpush.msra.mxu3 %v312_v6  ;;  %546 = vst [vmem:[#allocation2 + $0x87] sm:$0x1] %v2398_v30  ;;  %v295_v41 = vld [vmem:[%s2476_s20 + $0x80] sm:$0xff]  ;;  %v1992_v42 = vld [vmem:[%s3833_s5 + $0x70] sm:$0xff]  ;;  %v1991_v44 = vld [vmem:[%s3833_s5 + $0x68] sm:$0xff] }
  0x19   : > { %547 = vst [vmem:[#allocation2 + $0xa7] sm:$0x1] %v2398_v30  ;;  %1999 = vmatpush.msra.mxu1 %v1992_v42  ;;  %2253 = vmatpush.msra.mxu2 %v1992_v42  ;;  %v1990_v45 = vld [vmem:[%s3833_s5 + $0x60] sm:$0xff]  ;;  %v1989_v46 = vld [vmem:[%s3833_s5 + $0x58] sm:$0xff]  ;;  %v309_v47 = vld [vmem:[%s2476_s20 + $0xf0] sm:$0xff] }
  0x1a   : > { %435 = vmatpush.msra.mxu0 %v311_v7  ;;  %2250 = vmatpush.msra.mxu3 %v311_v7  ;;  %548 = vst [vmem:[#allocation2 + $0xc7] sm:$0x1] %v2398_v30  ;;  %v1988_v49 = vld [vmem:[%s3833_s5 + $0x50] sm:$0xff]  ;;  %v1987_v51 = vld [vmem:[%s3833_s5 + $0x48] sm:$0xff]  ;;  %v1986_v52 = vld [vmem:[%s3833_s5 + $0x40] sm:$0xff] }
  0x1b   : > { %2207 = vmatmul.msk.f32.vlgmr.msra.gmra.mxu0 %vm323_vm0, %v279_v8  ;;  %2224 = vmatmul.msk.f32.vlgmr.msra.gmra.mxu3 %vm323_vm0, %v296_v12  ;;  %549 = vst [vmem:[#allocation2 + $0xe7] sm:$0x1] %v2398_v30  ;;  %v1985_v53 = vld [vmem:[%s3833_s5 + $0x38] sm:$0xff]  ;;  %v1984_v56 = vld [vmem:[%s3833_s5 + $0x30] sm:$0xff]  ;;  %v1983_v58 = vld [vmem:[%s3833_s5 + $0x28] sm:$0xff] }
  0x1c   : > { %550 = vst [vmem:[#allocation2 + $0x107] sm:$0x1] %v2398_v30  ;;  %2252 = vmatpush.msrb.mxu3 %v1993_v37  ;;  %2000 = vmatpush.msra.mxu1 %v1991_v44  ;;  %v310_v54 = vld [vmem:[%s2476_s20 + $0xf8] sm:$0xff]  ;;  %v611_v59 = vld [vmem:[#allocation2 + $0x7] sm:$0xff]  ;;  %v2641_v60 = vld [vmem:[%s3831_s3 + $0x1] ss:$0 sm:$0xff] }
  0x1d   : > { %551 = vst [vmem:[#allocation2 + $0x127] sm:$0x1] %v2398_v30  ;;  %2255 = vmatpush.msra.mxu2 %v1991_v44  ;;  %v1982_v61 = vld [vmem:[%s3833_s5 + $0x20] sm:$0xff]  ;;  %v612_v63 = vld [vmem:[#allocation2 + $0xf] sm:$0xff]  ;;  %v1981_v0 = vld [vmem:[%s3833_s5 + $0x18] sm:$0xff]  ;;  %v711_v2 = vmul.f32 0.0, %v2641_v60 }
  0x1e   : > { %552 = vst [vmem:[#allocation2 + $0x147] sm:$0x1] %v2398_v30  ;;  %2254 = vmatpush.msrb.mxu3 %v1992_v42  ;;  %2001 = vmatpush.msra.mxu1 %v1990_v45  ;;  %v2650_v62 = vld [vmem:[%s3831_s3] ss:$0 sm:$0xff]  ;;  %v2660_v3 = vld [vmem:[%s3831_s3 + $0x2] ss:$0 sm:$0xff] }
  0x1f   : > { %553 = vst [vmem:[#allocation2 + $0x167] sm:$0x1] %v2398_v30  ;;  %2257 = vmatpush.msra.mxu2 %v1990_v45  ;;  %v645_v1 = vmul.f32 %v2650_v62, %v611_v59  ;;  %v775_v4 = vld [vmem:[#allocation2 + $0x9] sm:$0xff]  ;;  %v646_v5 = vmul.f32 %v2650_v62, %v612_v63  ;;  %v2666_v6 = vld [vmem:[%s3831_s3 + $0x3] ss:$0 sm:$0xff] }
  0x20   : > { %554 = vst [vmem:[#allocation2 + $0x187] sm:$0x1] %v2398_v30  ;;  %2256 = vmatpush.msrb.mxu3 %v1991_v44  ;;  %2002 = vmatpush.msra.mxu1 %v1989_v46  ;;  %v2725_v37 = vld [vmem:[%s3831_s3 + $0x8] ss:$0 sm:$0xff] }
  0x21   : > { %555 = vst [vmem:[#allocation2 + $0x1a7] sm:$0x1] %v2398_v30  ;;  %2259 = vmatpush.msra.mxu2 %v1989_v46 }
  0x22   : > { %556 = vst [vmem:[#allocation2 + $0x1c7] sm:$0x1] %v2398_v30  ;;  %2258 = vmatpush.msrb.mxu3 %v1990_v45  ;;  %2003 = vmatpush.msra.mxu1 %v1988_v49 }
  0x23   : > { %2208 = vmatmul.msk.f32.gmra.mxu0 %vm323_vm0, %v280_v9  ;;  %2225 = vmatmul.msk.f32.gmra.mxu3 %vm323_vm0, %v297_v14  ;;  %557 = vst [vmem:[#allocation2 + $0x1e7] sm:$0x1] %v2398_v30  ;;  %v809_v14 = vmul.f32 %v2660_v3, %v775_v4 }
  0x24   : > { %558 = vst [vmem:[#allocation2 + $0x207] sm:$0x1] %v2398_v30  ;;  %2260 = vmatpush.msrb.mxu3 %v1989_v46  ;;  %2261 = vmatpush.msra.mxu2 %v1988_v49 }
  0x25   : > { %561 = vst [vmem:[#allocation2 + $0x38] sm:$0x1] %v2398_v30  ;;  %2004 = vmatpush.msra.mxu1 %v1987_v51 }
  0x26   : > { %562 = vst [vmem:[#allocation2 + $0x58] sm:$0x1] %v2398_v30  ;;  %2262 = vmatpush.msrb.mxu3 %v1988_v49  ;;  %2263 = vmatpush.msra.mxu2 %v1987_v51 }
  0x27   : > { %563 = vst [vmem:[#allocation2 + $0x78] sm:$0x1] %v2398_v30  ;;  %2005 = vmatpush.msra.mxu1 %v1986_v52 }
  0x28   : > { %564 = vst [vmem:[#allocation2 + $0x98] sm:$0x1] %v2398_v30  ;;  %2264 = vmatpush.msrb.mxu3 %v1987_v51  ;;  %2265 = vmatpush.msra.mxu2 %v1986_v52 }
  0x29   : > { %565 = vst [vmem:[#allocation2 + $0xb8] sm:$0x1] %v2398_v30  ;;  %2006 = vmatpush.msra.mxu1 %v1985_v53 }
  0x2a   : > { %566 = vst [vmem:[#allocation2 + $0xd8] sm:$0x1] %v2398_v30  ;;  %2266 = vmatpush.msrb.mxu3 %v1986_v52  ;;  %2267 = vmatpush.msra.mxu2 %v1985_v53 }
  0x2b   : > { %2209 = vmatmul.msk.f32.gmra.mxu0 %vm323_vm0, %v281_v10  ;;  %2226 = vmatmul.msk.f32.gmra.mxu3 %vm323_vm0, %v298_v16  ;;  %567 = vst [vmem:[#allocation2 + $0xf8] sm:$0x1] %v2398_v30  ;;  %v1980_v10 = vld [vmem:[%s3833_s5 + $0x10] sm:$0xff]  ;;  %v2685_v16 = vld [vmem:[%s3831_s3 + $0x5] ss:$0 sm:$0xff] }
  0x2c   : > { %568 = vst [vmem:[#allocation2 + $0x118] sm:$0x1] %v2398_v30  ;;  %2007 = vmatpush.msra.mxu1 %v1984_v56  ;;  %2268 = vmatpush.msrb.mxu3 %v1985_v53 }
  0x2d   : > { %569 = vst [vmem:[#allocation2 + $0x138] sm:$0x1] %v2398_v30  ;;  %2269 = vmatpush.msra.mxu2 %v1984_v56 }
  0x2e   : > { %570 = vst [vmem:[#allocation2 + $0x158] sm:$0x1] %v2398_v30  ;;  %2008 = vmatpush.msra.mxu1 %v1983_v58  ;;  %2270 = vmatpush.msrb.mxu3 %v1984_v56 }
  0x2f   : > { %571 = vst [vmem:[#allocation2 + $0x178] sm:$0x1] %v2398_v30  ;;  %2271 = vmatpush.msra.mxu2 %v1983_v58 }
  0x30   : > { %572 = vst [vmem:[#allocation2 + $0x198] sm:$0x1] %v2398_v30  ;;  %2009 = vmatpush.msra.mxu1 %v1982_v61  ;;  %2272 = vmatpush.msrb.mxu3 %v1983_v58 }
  0x31   : > { %573 = vst [vmem:[#allocation2 + $0x1b8] sm:$0x1] %v2398_v30  ;;  %2273 = vmatpush.msra.mxu2 %v1982_v61 }
  0x32   : > { %574 = vst [vmem:[#allocation2 + $0x1d8] sm:$0x1] %v2398_v30  ;;  %2010 = vmatpush.msra.mxu1 %v1981_v0  ;;  %2274 = vmatpush.msrb.mxu3 %v1982_v61 }
  0x33   : > { %2210 = vmatmul.msk.f32.gmra.mxu0 %vm323_vm0, %v282_v11  ;;  %2227 = vmatmul.msk.f32.gmra.mxu3 %vm323_vm0, %v299_v18  ;;  %575 = vst [vmem:[#allocation2 + $0x1f8] sm:$0x1] %v2398_v30 }
  0x34   : > { %576 = vst [vmem:[#allocation2 + $0x218] sm:$0x1] %v2398_v30  ;;  %2275 = vmatpush.msra.mxu2 %v1981_v0  ;;  %2011 = vmatpush.msra.mxu1 %v1980_v10 }
  0x35   : > { %559 = vst [vmem:[#allocation2 + $0x227] sm:$0x1] %v2398_v30  ;;  %2276 = vmatpush.msrb.mxu3 %v1981_v0 }
  0x36   : > { %560 = vst [vmem:[#allocation2 + $0x18] sm:$0x1] %v2398_v30  ;;  %2277 = vmatpush.msra.mxu2 %v1980_v10 }
  0x37   : > { %577 = vst [vmem:[#allocation2 + $0x238] sm:$0x1] %v2398_v30  ;;  %2278 = vmatpush.msrb.mxu3 %v1980_v10 }
  0x3b   : > { %2211 = vmatmul.msk.f32.gmra.mxu0 %vm323_vm0, %v283_v13  ;;  %2228 = vmatmul.msk.f32.gmra.mxu3 %vm323_vm0, %v300_v20  ;;  %v743_v13 = vadd.f32 %v711_v2, %v645_v1 }
  0x3d   : > { %v776_v7 = vld [vmem:[#allocation2 + $0x11] sm:$0xff] }
  0x3e   : > { %v810_v20 = vmul.f32 %v2660_v3, %v776_v7 }
  0x43   : > { %2212 = vmatmul.msk.f32.gmra.mxu0 %vm323_vm0, %v284_v15  ;;  %2229 = vmatmul.msk.f32.gmra.mxu3 %vm323_vm0, %v301_v22  ;;  %v2680_v15 = vld [vmem:[%s3831_s3 + $0x4] ss:$0 sm:$0xff] }
  0x44   : > { %v1978_v22 = vld [vmem:[%s3833_s5] sm:$0xff] }
  0x4b   : > { %2213 = vmatmul.msk.f32.gmra.mxu0 %vm323_vm0, %v285_v17  ;;  %2230 = vmatmul.msk.f32.gmra.mxu3 %vm323_vm0, %v302_v24  ;;  %v1979_v17 = vld [vmem:[%s3833_s5 + $0x8] sm:$0xff]  ;;  %v2701_v24 = vld [vmem:[%s3831_s3 + $0x6] ss:$0 sm:$0xff] }
  0x4c   : > { %2012 = vmatpush.msra.mxu1 %v1979_v17  ;;  %2279 = vmatpush.msra.mxu2 %v1979_v17 }
  0x4d   : > { %2280 = vmatpush.msrb.mxu3 %v1979_v17 }
  0x4e   : > { %2013 = vmatpush.msra.mxu1 %v1978_v22  ;;  %2281 = vmatpush.msra.mxu2 %v1978_v22 }
  0x4f   : > { %2282 = vmatpush.msrb.mxu3 %v1978_v22 }
  0x53   : > { %2214 = vmatmul.msk.f32.gmra.mxu0 %vm323_vm0, %v286_v19  ;;  %2231 = vmatmul.msk.f32.gmra.mxu3 %vm323_vm0, %v303_v26  ;;  %v744_v19 = vadd.f32 %v711_v2, %v646_v5 }
  0x5b   : > { %2215 = vmatmul.msk.f32.gmra.mxu0 %vm323_vm0, %v287_v21  ;;  %2232 = vmatmul.msk.f32.gmra.mxu3 %vm323_vm0, %v304_v28  ;;  %v2710_v28 = vld [vmem:[%s3832_s4] ss:$0 sm:$0xff] }
  0x63   : > { %2216 = vmatmul.msk.f32.gmra.mxu0 %vm323_vm0, %v288_v23  ;;  %2233 = vmatmul.msk.f32.gmra.mxu3 %vm323_vm0, %v305_v31  ;;  %v2718_v31 = vld [vmem:[%s3831_s3 + $0x7] ss:$0 sm:$0xff] }
  0x6b   : > { %2217 = vmatmul.msk.f32.gmra.mxu0 %vm323_vm0, %v289_v25  ;;  %2234 = vmatmul.msk.f32.gmra.mxu3 %vm323_vm0, %v306_v33  ;;  %v842_v33 = vadd.f32 %v810_v20, %v744_v19 }
  0x73   : > { %2218 = vmatmul.msk.f32.gmra.mxu0 %vm323_vm0, %v290_v27  ;;  %2235 = vmatmul.msk.f32.gmra.mxu3 %vm323_vm0, %v307_v35  ;;  %v841_v27 = vadd.f32 %v809_v14, %v743_v13 }
  0x75   : > { %v877_v42 = vadd.f32 %v2710_v28, %v841_v27 }
  0x7b   : > { %2219 = vmatmul.msk.f32.gmra.mxu0 %vm323_vm0, %v291_v29  ;;  %2236 = vmatmul.msk.f32.gmra.mxu3 %vm323_vm0, %v308_v39 }
  0x83   : > { %2220 = vmatmul.msk.f32.gmra.mxu0 %vm323_vm0, %v292_v32  ;;  %2237 = vmatmul.msk.f32.gmra.mxu3 %vm323_vm0, %v309_v47  ;;  %v878_v47 = vadd.f32 %v2710_v28, %v842_v33 }
  0x8b   : > { %2221 = vmatmul.msk.f32.gmra.mxu0 %vm323_vm0, %v293_v34  ;;  %2238 = vmatmul.msk.f32.gmra.mxu3 %vm323_vm0, %v310_v54 }
  0x93   : > { %2222 = vmatmul.msk.f32.gmra.mxu0 %vm323_vm0, %v294_v36 }
  0x98   : > { %v437_v40 = vpop.f32.mrf.mxu0 }
  0x99   : > { %v2582_v43 = vadd.f32 %v2569_v38, %v437_v40 }
  0x9b   : > { %579 = vst [vmem:[#allocation2 + $0x28] sm:$0xff] %v2582_v43  ;;  %2223 = vmatmul.msk.f32.gmra.mxu0 %vm323_vm0, %v295_v41  ;;  %v1041_v29 = vmul.f32 %v2680_v15, %v2582_v43  ;;  %v713_v2 = vmul.f32 %v2641_v60, %v2582_v43 }
  0x9e   : > { %v488_v54 = vpop.f32.mrf.mxu3 }
  0x9f   : > { %v489_v58 = vadd.f32 %v2569_v38, %v488_v54 }
  0xa0   : > { %v440_v48 = vpop.f32.mrf.mxu0 }
  0xa1   : > { %v2608_v50 = vadd.f32 %v2569_v38, %v440_v48  ;;  %596 = vst [vmem:[#allocation2 + $0x130] sm:$0xff] %v489_v58 }
  0xa2   : > { %v941_v11 = vld [vmem:[#allocation2 + $0x27] sm:$0xff] }
  0xa3   : > { %580 = vst [vmem:[#allocation2 + $0x30] sm:$0xff] %v2608_v50  ;;  %v975_v23 = vmul.f32 %v2666_v6, %v941_v11  ;;  %v1042_v26 = vmul.f32 %v2680_v15, %v2608_v50  ;;  %v647_v59 = vmul.f32 %v2650_v62, %v941_v11  ;;  %v714_v13 = vmul.f32 %v2641_v60, %v2608_v50 }
  0xa5   : > { %v1073_v35 = vadd.f32 %v1041_v29, %v975_v23  ;;  %v745_v43 = vadd.f32 %v713_v2, %v647_v59 }
  0xa6   : > { %v491_v50 = vpop.f32.mrf.mxu3 }
  0xa7   : > { %v492_v27 = vadd.f32 %v2569_v38, %v491_v50 }
  0xa8   : > { %v443_v55 = vpop.f32.mrf.mxu0 }
  0xa9   : > { %v2633_v57 = vadd.f32 %v2569_v38, %v443_v55  ;;  %597 = vst [vmem:[#allocation2 + $0x148] sm:$0xff] %v492_v27 }
  0xaa   : > { %v2668_v8 = vld [vmem:[#allocation2 + $0x2f] sm:$0xff] }
  0xab   : > { %581 = vst [vmem:[#allocation2 + $0x48] sm:$0xff] %v2633_v57  ;;  %v1105_v18 = vld [vmem:[#allocation2 + $0x29] sm:$0xff]  ;;  %v976_v21 = vmul.f32 %v2666_v6, %v2668_v8  ;;  %v1106_v32 = vld [vmem:[#allocation2 + $0x31] sm:$0xff]  ;;  %v1400_v45 = vmul.f32 %v2718_v31, %v2633_v57  ;;  %v648_v10 = vmul.f32 %v2650_v62, %v2668_v8  ;;  %v1043_v29 = vmul.f32 %v2680_v15, %v2633_v57 }
  0xac   : > { %v1139_v30 = vmul.f32 %v2685_v16, %v1105_v18  ;;  %v1140_v40 = vmul.f32 %v2685_v16, %v1106_v32  ;;  %v811_v4 = vmul.f32 %v2660_v3, %v1105_v18 }
  0xad   : > { %v1074_v34 = vadd.f32 %v1042_v26, %v976_v21  ;;  %v746_v26 = vadd.f32 %v714_v13, %v648_v10 }
  0xae   : > { %v1171_v44 = vadd.f32 %v1139_v30, %v1073_v35  ;;  %v843_v22 = vadd.f32 %v811_v4, %v745_v43  ;;  %v494_v10 = vpop.f32.mrf.mxu3 }
  0xaf   : > { %v1172_v48 = vadd.f32 %v1140_v40, %v1074_v34 }
  0xb0   : > { %v446_v9 = vpop.f32.mrf.mxu0  ;;  %v1235_v61 = vadd.f32 %v1171_v44, %v877_v42  ;;  %v715_v44 = vmul.f32 %v2641_v60, %v2633_v57 }
  0xb1   : > { %v2674_v12 = vadd.f32 %v2569_v38, %v446_v9  ;;  %v1236_v7 = vadd.f32 %v1172_v48, %v878_v47  ;;  %v879_v48 = vadd.f32 %v2710_v28, %v843_v22 }
  0xb2   : > { %v2703_v25 = vld [vmem:[#allocation2 + $0x47] sm:$0xff] }
  0xb3   : > { %582 = vst [vmem:[#allocation2 + $0x50] sm:$0xff] %v2674_v12  ;;  %v1334_v36 = vmul.f32 %v2701_v24, %v2703_v25  ;;  %v1401_v56 = vmul.f32 %v2718_v31, %v2674_v12  ;;  %v977_v18 = vmul.f32 %v2666_v6, %v2703_v25  ;;  %v1044_v33 = vmul.f32 %v2680_v15, %v2674_v12 }
  0xb5   : > { %v1432_v52 = vadd.f32 %v1400_v45, %v1334_v36  ;;  %v812_v36 = vmul.f32 %v2660_v3, %v1106_v32 }
  0xb8   : > { %v449_v39 = vpop.f32.mrf.mxu0 }
  0xb9   : > { %v2729_v41 = vadd.f32 %v2569_v38, %v449_v39  ;;  %v1075_v39 = vadd.f32 %v1043_v29, %v977_v18 }
  0xba   : > { %v2734_v46 = vld [vmem:[#allocation2 + $0x49] sm:$0xff]  ;;  %v2737_v51 = vld [vmem:[#allocation2 + $0x51] sm:$0xff] }
  0xbb   : > { %v1301_v49 = vld [vmem:[#allocation2 + $0x4f] sm:$0xff]  ;;  %583 = vst [vmem:[#allocation2 + $0x68] sm:$0xff] %v2729_v41  ;;  %v1498_v53 = vmul.f32 %v2725_v37, %v2734_v46  ;;  %v1499_v1 = vmul.f32 %v2725_v37, %v2737_v51  ;;  %v1141_v30 = vmul.f32 %v2685_v16, %v2734_v46  ;;  %v1402_v32 = vmul.f32 %v2718_v31, %v2729_v41 }
  0xbc   : > { %v1335_v55 = vmul.f32 %v2701_v24, %v1301_v49  ;;  %v978_v20 = vmul.f32 %v2666_v6, %v1301_v49  ;;  %v813_v18 = vmul.f32 %v2660_v3, %v2734_v46  ;;  %v814_v22 = vmul.f32 %v2660_v3, %v2737_v51 }
  0xbd   : > { %v1530_v63 = vadd.f32 %v1498_v53, %v1432_v52  ;;  %v844_v52 = vadd.f32 %v812_v36, %v746_v26  ;;  %v1173_v54 = vadd.f32 %v1141_v30, %v1075_v39 }
  0xbe   : > { %v1433_v0 = vadd.f32 %v1401_v56, %v1335_v55  ;;  %v1076_v42 = vadd.f32 %v1044_v33, %v978_v20  ;;  %v1142_v55 = vmul.f32 %v2685_v16, %v2737_v51  ;;  %v649_v56 = vmul.f32 %v2650_v62, %v2703_v25 }
  0xbf   : > { %v2752_v5 = vadd.f32 %v1530_v63, %v1235_v61  ;;  %v650_v61 = vmul.f32 %v2650_v62, %v1301_v49  ;;  %v716_v25 = vmul.f32 %v2641_v60, %v2674_v12  ;;  %v1237_v13 = vadd.f32 %v1173_v54, %v879_v48  ;;  %v497_v48 = vpop.f32.mrf.mxu3 }
  0xc0   : > { %v1531_v9 = vadd.f32 %v1499_v1, %v1433_v0  ;;  %v452_v11 = vpop.f32.mrf.mxu0  ;;  %v1174_v1 = vadd.f32 %v1142_v55, %v1076_v42  ;;  %v880_v43 = vadd.f32 %v2710_v28, %v844_v52  ;;  %v747_v50 = vadd.f32 %v715_v44, %v649_v56 }
  0xc1   : > { %v2759_v14 = vadd.f32 %v2569_v38, %v452_v11  ;;  %v1722_v17 = vmul.f32 0.044715, %v2752_v5  ;;  %v1045_v52 = vmul.f32 %v2680_v15, %v2729_v41 }
  0xc2   : > { %v2762_v19 = vadd.f32 %v1531_v9, %v1236_v7  ;;  %v2770_v23 = vld [vmem:[#allocation2 + $0x67] sm:$0xff]  ;;  %v1238_v27 = vadd.f32 %v1174_v1, %v880_v43  ;;  %v845_v33 = vadd.f32 %v813_v18, %v747_v50 }
  0xc3   : > { %584 = vst [vmem:[#allocation2 + $0x70] sm:$0xff] %v2759_v14  ;;  %v1754_v8 = vmul.f32 %v1722_v17, %v2752_v5  ;;  %v1336_v40 = vmul.f32 %v2701_v24, %v2770_v23  ;;  %v1403_v4 = vmul.f32 %v2718_v31, %v2759_v14  ;;  %v495_v17 = vadd.f32 %v2569_v38, %v494_v10 }
  0xc4   : > { %v1723_v21 = vmul.f32 0.044715, %v2762_v19  ;;  %v979_v51 = vmul.f32 %v2666_v6, %v2770_v23  ;;  %v1046_v56 = vmul.f32 %v2680_v15, %v2759_v14 }
  0xc5   : > { %v1786_v34 = vmul.f32 %v1754_v8, %v2752_v5  ;;  %v1434_v63 = vadd.f32 %v1402_v32, %v1336_v40  ;;  %598 = vst [vmem:[#allocation2 + $0x150] sm:$0xff] %v495_v17  ;;  %v1690_v40 = vmul.f32 0.5, %v2752_v5  ;;  %v498_v32 = vadd.f32 %v2569_v38, %v497_v48 }
  0xc6   : > { %v1755_v35 = vmul.f32 %v1723_v21, %v2762_v19  ;;  %v748_v21 = vadd.f32 %v716_v25, %v650_v61 }
  0xc7   : > { %v1818_v45 = vadd.f32 %v1786_v34, %v2752_v5  ;;  %v717_v5 = vmul.f32 %v2641_v60, %v2729_v41  ;;  %v1691_v41 = vmul.f32 0.5, %v2762_v19  ;;  %599 = vst [vmem:[#allocation2 + $0x168] sm:$0xff] %v498_v32 }
  0xc8   : > { %v1787_v47 = vmul.f32 %v1755_v35, %v2762_v19  ;;  %v455_v53 = vpop.f32.mrf.mxu0  ;;  %v846_v39 = vadd.f32 %v814_v22, %v748_v21 }
  0xc9   : > { %v2796_v57 = vadd.f32 %v2569_v38, %v455_v53  ;;  %v1850_v58 = vmul.f32 0.7978846, %v1818_v45 }
  0xca   : > { %v1819_v59 = vadd.f32 %v1787_v47, %v2762_v19  ;;  %v2800_v0 = vld [vmem:[#allocation2 + $0x69] sm:$0xff]  ;;  %v2806_v7 = vld [vmem:[#allocation2 + $0x71] sm:$0xff]  ;;  %v882_v1 = vadd.f32 %v2710_v28, %v846_v39 }
  0xcb   : > { %v2802_v2 = vld [vmem:[#allocation2 + $0x6f] sm:$0xff]  ;;  %585 = vst [vmem:[#allocation2 + $0x88] sm:$0xff] %v2796_v57  ;;  %2304 = vtanh.f32 %v1850_v58  ;;  %v1500_v49 = vmul.f32 %v2725_v37, %v2800_v0  ;;  %v1501_v8 = vmul.f32 %v2725_v37, %v2806_v7  ;;  %v1143_v55 = vmul.f32 %v2685_v16, %v2800_v0 }
  0xcc   : > { %v1851_v9 = vmul.f32 0.7978846, %v1819_v59  ;;  %v1337_v11 = vmul.f32 %v2701_v24, %v2802_v2  ;;  %v980_v44 = vmul.f32 %v2666_v6, %v2802_v2  ;;  %v1404_v19 = vmul.f32 %v2718_v31, %v2796_v57 }
  0xcd   : > { %v1532_v12 = vadd.f32 %v1500_v49, %v1434_v63  ;;  %v881_v63 = vadd.f32 %v2710_v28, %v845_v33  ;;  %v815_v33 = vmul.f32 %v2660_v3, %v2800_v0 }
  0xce   : > { %v1435_v20 = vadd.f32 %v1403_v4, %v1337_v11  ;;  %2306 = vtanh.f32 %v1851_v9  ;;  %v1077_v4 = vadd.f32 %v1045_v52, %v979_v51  ;;  %v1078_v9 = vadd.f32 %v1046_v56, %v980_v44 }
  0xcf   : > { %v2823_v26 = vadd.f32 %v1532_v12, %v1237_v13  ;;  %v651_v11 = vmul.f32 %v2650_v62, %v2770_v23  ;;  %v718_v13 = vmul.f32 %v2641_v60, %v2759_v14  ;;  %v1144_v12 = vmul.f32 %v2685_v16, %v2806_v7 }
  0xd0   : > { %v1533_v29 = vadd.f32 %v1501_v8, %v1435_v20  ;;  %v458_v30 = vpop.f32.mrf.mxu0  ;;  %v1175_v18 = vadd.f32 %v1143_v55, %v1077_v4  ;;  %v652_v23 = vmul.f32 %v2650_v62, %v2802_v2 }
  0xd1   : > { %v2305_v34 = vpop.eup %2304  ;;  %v2826_v46 = vadd.f32 %v2569_v38, %v458_v30  ;;  %v1724_v35 = vmul.f32 0.044715, %v2823_v26  ;;  %v1176_v22 = vadd.f32 %v1144_v12, %v1078_v9  ;;  %v749_v44 = vadd.f32 %v717_v5, %v651_v11 }
  0xd2   : > { %v2829_v36 = vadd.f32 %v1533_v29, %v1238_v27  ;;  %v1914_v42 = vadd.f32 1.0, %v2305_v34  ;;  %v2841_v53 = vld [vmem:[#allocation2 + $0x87] sm:$0xff]  ;;  %v750_v48 = vadd.f32 %v718_v13, %v652_v23 }
  0xd3   : > { %586 = vst [vmem:[#allocation2 + $0x90] sm:$0xff] %v2826_v46  ;;  %v1756_v45 = vmul.f32 %v1724_v35, %v2823_v26  ;;  %v1338_v25 = vmul.f32 %v2701_v24, %v2841_v53  ;;  %v1405_v29 = vmul.f32 %v2718_v31, %v2826_v46  ;;  %v500_v35 = vpop.f32.mrf.mxu3  ;;  %v847_v52 = vadd.f32 %v815_v33, %v749_v44 }
  0xd4   : > { %v1725_v47 = vmul.f32 0.044715, %v2829_v36  ;;  %v1946_v54 = vmul.f32 %v1914_v42, %v1690_v40  ;;  %v2307_v58 = vpop.eup %2306  ;;  %v1239_v42 = vadd.f32 %v1175_v18, %v881_v63  ;;  %v501_v51 = vadd.f32 %v2569_v38, %v500_v35 }
  0xd5   : > { %v1788_v59 = vmul.f32 %v1756_v45, %v2823_v26  ;;  %v1915_v43 = vadd.f32 1.0, %v2307_v58  ;;  %v1436_v50 = vadd.f32 %v1404_v19, %v1338_v25  ;;  %v1240_v55 = vadd.f32 %v1176_v22, %v882_v1 }
  0xd6   : > { %v1757_v61 = vmul.f32 %v1725_v47, %v2829_v36  ;;  %2014 = vmatmul.f32.vlgmr.msra.gmra.mxu1 %v1946_v54  ;;  %600 = vst [vmem:[#allocation2 + $0x170] sm:$0xff] %v501_v51  ;;  %v816_v54 = vmul.f32 %v2660_v3, %v2806_v7  ;;  %v981_v5 = vmul.f32 %v2666_v6, %v2841_v53  ;;  %v1692_v25 = vmul.f32 0.5, %v2823_v26 }
  0xd7   : > { %v1820_v49 = vadd.f32 %v1788_v59, %v2823_v26  ;;  %v1947_v40 = vmul.f32 %v1915_v43, %v1691_v41  ;;  %v1047_v59 = vmul.f32 %v2680_v15, %v2796_v57  ;;  %v653_v26 = vmul.f32 %v2650_v62, %v2841_v53 }
  0xd8   : > { %v1789_v10 = vmul.f32 %v1757_v61, %v2829_v36  ;;  %v461_v17 = vpop.f32.mrf.mxu0  ;;  %v719_v61 = vmul.f32 %v2641_v60, %v2796_v57  ;;  %v848_v1 = vadd.f32 %v816_v54, %v750_v48  ;;  %v1693_v53 = vmul.f32 0.5, %v2829_v36 }
  0xd9   : > { %v2868_v20 = vadd.f32 %v2569_v38, %v461_v17  ;;  %v1852_v8 = vmul.f32 0.7978846, %v1820_v49  ;;  %v883_v17 = vadd.f32 %v2710_v28, %v847_v52  ;;  %v1079_v12 = vadd.f32 %v1047_v59, %v981_v5 }
  0xda   : > { %v1821_v21 = vadd.f32 %v1789_v10, %v2829_v36  ;;  %v2873_v14 = vld [vmem:[#allocation2 + $0x89] sm:$0xff]  ;;  %v2879_v30 = vld [vmem:[#allocation2 + $0x91] sm:$0xff]  ;;  %v884_v22 = vadd.f32 %v2710_v28, %v848_v1 }
  0xdb   : > { %v2875_v27 = vld [vmem:[#allocation2 + $0x8f] sm:$0xff]  ;;  %587 = vst [vmem:[#allocation2 + $0xa8] sm:$0xff] %v2868_v20  ;;  %2308 = vtanh.f32 %v1852_v8  ;;  %v1502_v2 = vmul.f32 %v2725_v37, %v2873_v14  ;;  %v1503_v0 = vmul.f32 %v2725_v37, %v2879_v30  ;;  %v1145_v49 = vmul.f32 %v2685_v16, %v2873_v14  ;;  %v503_v13 = vpop.f32.mrf.mxu3 }
  0xdc   : > { %v1853_v34 = vmul.f32 0.7978846, %v1821_v21  ;;  %v1339_v39 = vmul.f32 %v2701_v24, %v2875_v27  ;;  %v982_v10 = vmul.f32 %v2666_v6, %v2875_v27  ;;  %v504_v19 = vadd.f32 %v2569_v38, %v503_v13 }
  0xdd   : > { %v1534_v45 = vadd.f32 %v1502_v2, %v1436_v50  ;;  %v1048_v8 = vmul.f32 %v2680_v15, %v2826_v46  ;;  %v1177_v33 = vadd.f32 %v1145_v49, %v1079_v12  ;;  %v817_v36 = vmul.f32 %v2660_v3, %v2873_v14 }
  0xde   : > { %v1437_v47 = vadd.f32 %v1405_v29, %v1339_v39  ;;  %2017 = vmatmul.f32.gmra.mxu1 %v1947_v40  ;;  %2310 = vtanh.f32 %v1853_v34  ;;  %v720_v29 = vmul.f32 %v2641_v60, %v2826_v46  ;;  %601 = vst [vmem:[#allocation2 + $0x188] sm:$0xff] %v504_v19  ;;  %v1406_v40 = vmul.f32 %v2718_v31, %v2868_v20 }
  0xdf   : > { %v2893_v32 = vadd.f32 %v1534_v45, %v1239_v42  ;;  %v1080_v2 = vadd.f32 %v1048_v8, %v982_v10  ;;  %v751_v42 = vadd.f32 %v719_v61, %v653_v26  ;;  %v1146_v46 = vmul.f32 %v2685_v16, %v2879_v30 }
  0xe0   : > { %v1535_v56 = vadd.f32 %v1503_v0, %v1437_v47  ;;  %v464_v58 = vpop.f32.mrf.mxu0  ;;  %v654_v45 = vmul.f32 %v2650_v62, %v2875_v27  ;;  %v1049_v52 = vmul.f32 %v2680_v15, %v2868_v20  ;;  %v1241_v54 = vadd.f32 %v1177_v33, %v883_v17 }
  0xe1   : > { %v2309_v63 = vpop.eup %2308  ;;  %v2902_v41 = vadd.f32 %v2569_v38, %v464_v58  ;;  %v1726_v7 = vmul.f32 0.044715, %v2893_v32  ;;  %v1178_v58 = vadd.f32 %v1146_v46, %v1080_v2  ;;  %v1694_v13 = vmul.f32 0.5, %v2893_v32 }
  0xe2   : > { %v2905_v4 = vadd.f32 %v1535_v56, %v1240_v55  ;;  %v1916_v9 = vadd.f32 1.0, %v2309_v63  ;;  %v1306_v43 = vld [vmem:[#allocation2 + $0xa7] sm:$0xff]  ;;  %v752_v49 = vadd.f32 %v720_v29, %v654_v45  ;;  %v849_v17 = vadd.f32 %v817_v36, %v751_v42 }
  0xe3   : > { %588 = vst [vmem:[#allocation2 + $0xb0] sm:$0xff] %v2902_v41  ;;  %v1758_v57 = vmul.f32 %v1726_v7, %v2893_v32  ;;  %v1340_v34 = vmul.f32 %v2701_v24, %v1306_v43  ;;  %v1407_v14 = vmul.f32 %v2718_v31, %v2902_v41  ;;  %v506_v63 = vpop.f32.mrf.mxu3  ;;  %v818_v26 = vmul.f32 %v2660_v3, %v2879_v30 }
  0xe4   : > { %v1727_v11 = vmul.f32 0.044715, %v2905_v4  ;;  %v1948_v18 = vmul.f32 %v1916_v9, %v1692_v25  ;;  %v2311_v21 = vpop.eup %2310  ;;  %v507_v25 = vadd.f32 %v2569_v38, %v506_v63  ;;  %v983_v9 = vmul.f32 %v2666_v6, %v1306_v43 }
  0xe5   : > { %v1790_v23 = vmul.f32 %v1758_v57, %v2893_v32  ;;  %v1917_v44 = vadd.f32 1.0, %v2311_v21  ;;  %v1438_v55 = vadd.f32 %v1406_v40, %v1340_v34  ;;  %v1242_v12 = vadd.f32 %v1178_v58, %v884_v22 }
  0xe6   : > { %v1759_v50 = vmul.f32 %v1727_v11, %v2905_v4  ;;  %2020 = vmatmul.f32.gmra.mxu1 %v1948_v18  ;;  %602 = vst [vmem:[#allocation2 + $0x190] sm:$0xff] %v507_v25  ;;  %v655_v18 = vmul.f32 %v2650_v62, %v1306_v43  ;;  %v1081_v22 = vadd.f32 %v1049_v52, %v983_v9 }
  0xe7   : > { %v1822_v35 = vadd.f32 %v1790_v23, %v2893_v32  ;;  %v1949_v1 = vmul.f32 %v1917_v44, %v1693_v53  ;;  %v721_v32 = vmul.f32 %v2641_v60, %v2868_v20  ;;  %v1695_v20 = vmul.f32 0.5, %v2905_v4 }
  0xe8   : > { %v1791_v39 = vmul.f32 %v1759_v50, %v2905_v4  ;;  %v467_v51 = vpop.f32.mrf.mxu0  ;;  %v850_v50 = vadd.f32 %v818_v26, %v752_v49  ;;  %v722_v63 = vmul.f32 %v2641_v60, %v2902_v41 }
  0xe9   : > { %v2939_v47 = vadd.f32 %v2569_v38, %v467_v51  ;;  %v1854_v0 = vmul.f32 0.7978846, %v1822_v35  ;;  %v885_v35 = vadd.f32 %v2710_v28, %v849_v17  ;;  %v753_v40 = vadd.f32 %v721_v32, %v655_v18 }
  0xea   : > { %v1823_v48 = vadd.f32 %v1791_v39, %v2905_v4  ;;  %v1470_v56 = vld [vmem:[#allocation2 + $0xa9] sm:$0xff]  ;;  %v2946_v59 = vld [vmem:[#allocation2 + $0xb1] sm:$0xff]  ;;  %v1050_v39 = vmul.f32 %v2680_v15, %v2902_v41  ;;  %v886_v58 = vadd.f32 %v2710_v28, %v850_v50 }
  0xeb   : > { %v1307_v5 = vld [vmem:[#allocation2 + $0xaf] sm:$0xff]  ;;  %589 = vst [vmem:[#allocation2 + $0xc8] sm:$0xff] %v2939_v47  ;;  %2312 = vtanh.f32 %v1854_v0  ;;  %v1504_v61 = vmul.f32 %v2725_v37, %v1470_v56  ;;  %v1505_v11 = vmul.f32 %v2725_v37, %v2946_v59  ;;  %v1147_v21 = vmul.f32 %v2685_v16, %v1470_v56  ;;  %v509_v46 = vpop.f32.mrf.mxu3 }
  0xec   : > { %v1855_v27 = vmul.f32 0.7978846, %v1823_v48  ;;  %v1341_v7 = vmul.f32 %v2701_v24, %v1307_v5  ;;  %v984_v29 = vmul.f32 %v2666_v6, %v1307_v5  ;;  %v819_v53 = vmul.f32 %v2660_v3, %v1470_v56 }
  0xed   : > { %v1536_v10 = vadd.f32 %v1504_v61, %v1438_v55  ;;  %v1179_v36 = vadd.f32 %v1147_v21, %v1081_v22  ;;  %v510_v48 = vadd.f32 %v2569_v38, %v509_v46  ;;  %v656_v4 = vmul.f32 %v2650_v62, %v1307_v5 }
  0xee   : > { %2314 = vtanh.f32 %v1855_v27  ;;  %v1439_v57 = vadd.f32 %v1407_v14, %v1341_v7  ;;  %2023 = vmatmul.f32.gmra.mxu1 %v1949_v1  ;;  %v1082_v52 = vadd.f32 %v1050_v39, %v984_v29  ;;  %v1148_v61 = vmul.f32 %v2685_v16, %v2946_v59 }
  0xef   : > { %v2959_v19 = vadd.f32 %v1536_v10, %v1241_v54  ;;  %v851_v54 = vadd.f32 %v819_v53, %v753_v40  ;;  %603 = vst [vmem:[#allocation2 + $0x1a8] sm:$0xff] %v510_v48  ;;  %v1408_v25 = vmul.f32 %v2718_v31, %v2939_v47  ;;  %v1051_v5 = vmul.f32 %v2680_v15, %v2939_v47 }
  0xf0   : > { %v1537_v8 = vadd.f32 %v1505_v11, %v1439_v57  ;;  %v470_v23 = vpop.f32.mrf.mxu0  ;;  %v1243_v49 = vadd.f32 %v1179_v36, %v885_v35  ;;  %v1180_v10 = vadd.f32 %v1148_v61, %v1082_v52  ;;  %v820_v11 = vmul.f32 %v2660_v3, %v2946_v59 }
  0xf1   : > { %v2313_v33 = vpop.eup %2312  ;;  %v2967_v30 = vadd.f32 %v2569_v38, %v470_v23  ;;  %v1728_v43 = vmul.f32 0.044715, %v2959_v19  ;;  %v2996_v57 = vadd.f32 %v2710_v28, %v851_v54  ;;  %v754_v26 = vadd.f32 %v722_v63, %v656_v4 }
  0xf2   : > { %v2970_v34 = vadd.f32 %v1537_v8, %v1242_v12  ;;  %v1918_v2 = vadd.f32 1.0, %v2313_v33  ;;  %v1308_v45 = vld [vmem:[#allocation2 + $0xc7] sm:$0xff]  ;;  %v723_v46 = vmul.f32 %v2641_v60, %v2939_v47 }
  0xf3   : > { %590 = vst [vmem:[#allocation2 + $0xd0] sm:$0xff] %v2967_v30  ;;  %v1760_v51 = vmul.f32 %v1728_v43, %v2959_v19  ;;  %v1342_v27 = vmul.f32 %v2701_v24, %v1308_v45  ;;  %v1409_v23 = vmul.f32 %v2718_v31, %v2967_v30  ;;  %v985_v29 = vmul.f32 %v2666_v6, %v1308_v45  ;;  %v512_v53 = vpop.f32.mrf.mxu3 }
  0xf4   : > { %v2315_v42 = vpop.eup %2314  ;;  %v1729_v44 = vmul.f32 0.044715, %v2970_v34  ;;  %v1950_v0 = vmul.f32 %v1918_v2, %v1694_v13  ;;  %v513_v43 = vadd.f32 %v2569_v38, %v512_v53  ;;  %v1052_v2 = vmul.f32 %v2680_v15, %v2967_v30 }
  0xf5   : > { %v1792_v55 = vmul.f32 %v1760_v51, %v2959_v19  ;;  %v1919_v14 = vadd.f32 1.0, %v2315_v42  ;;  %v1440_v12 = vadd.f32 %v1408_v25, %v1342_v27  ;;  %v657_v35 = vmul.f32 %v2650_v62, %v1308_v45 }
  0xf6   : > { %v1761_v56 = vmul.f32 %v1729_v44, %v2970_v34  ;;  %2026 = vmatmul.f32.gmra.mxu1 %v1950_v0  ;;  %604 = vst [vmem:[#allocation2 + $0x1b0] sm:$0xff] %v513_v43  ;;  %v1244_v51 = vadd.f32 %v1180_v10, %v886_v58  ;;  %v1083_v54 = vadd.f32 %v1051_v5, %v985_v29  ;;  %v1697_v63 = vmul.f32 0.5, %v2970_v34 }
  0xf7   : > { %v1824_v7 = vadd.f32 %v1792_v55, %v2959_v19  ;;  %v1951_v18 = vmul.f32 %v1919_v14, %v1695_v20  ;;  %v1696_v20 = vmul.f32 0.5, %v2959_v19  ;;  %v852_v55 = vadd.f32 %v820_v11, %v754_v26 }
  0xf8   : > { %v1793_v1 = vmul.f32 %v1761_v56, %v2970_v34  ;;  %v473_v9 = vpop.f32.mrf.mxu0  ;;  %v755_v56 = vadd.f32 %v723_v46, %v657_v35  ;;  %v724_v25 = vmul.f32 %v2641_v60, %v2967_v30 }
  0xf9   : > { %v3001_v41 = vadd.f32 %v2569_v38, %v473_v9  ;;  %v1856_v13 = vmul.f32 0.7978846, %v1824_v7 }
  0xfa   : > { %v1825_v17 = vadd.f32 %v1793_v1, %v2970_v34  ;;  %v1472_v8 = vld [vmem:[#allocation2 + $0xc9] sm:$0xff]  ;;  %v1473_v50 = vld [vmem:[#allocation2 + $0xd1] sm:$0xff] }
  0xfb   : > { %v1309_v21 = vld [vmem:[#allocation2 + $0xcf] sm:$0xff]  ;;  %591 = vst [vmem:[#allocation2 + $0xe8] sm:$0xff] %v3001_v41  ;;  %2316 = vtanh.f32 %v1856_v13  ;;  %v1506_v32 = vmul.f32 %v2725_v37, %v1472_v8  ;;  %v1507_v22 = vmul.f32 %v2725_v37, %v1473_v50  ;;  %v1149_v44 = vmul.f32 %v2685_v16, %v1472_v8  ;;  %v515_v10 = vpop.f32.mrf.mxu3 }
  0xfc   : > { %v1857_v59 = vmul.f32 0.7978846, %v1825_v17  ;;  %v1343_v33 = vmul.f32 %v2701_v24, %v1309_v21  ;;  %v986_v42 = vmul.f32 %v2666_v6, %v1309_v21  ;;  %v821_v45 = vmul.f32 %v2660_v3, %v1472_v8 }
  0xfd   : > { %v1538_v39 = vadd.f32 %v1506_v32, %v1440_v12  ;;  %v658_v4 = vmul.f32 %v2650_v62, %v1309_v21  ;;  %v1150_v61 = vmul.f32 %v2685_v16, %v1473_v50  ;;  %v1181_v7 = vadd.f32 %v1149_v44, %v1083_v54 }
  0xfe   : > { %2318 = vtanh.f32 %v1857_v59  ;;  %v1441_v40 = vadd.f32 %v1409_v23, %v1343_v33  ;;  %2029 = vmatmul.f32.gmra.mxu1 %v1951_v18  ;;  %v1084_v48 = vadd.f32 %v1052_v2, %v986_v42  ;;  %v853_v13 = vadd.f32 %v821_v45, %v755_v56  ;;  %v3054_v42 = vld [vmem:[%s3830_s2] ss:$0 sm:$0xff] }
  0xff   : > { %v1602_v36 = vadd.f32 %v1538_v39, %v1243_v49  ;;  %v516_v26 = vadd.f32 %v2569_v38, %v515_v10  ;;  %v756_v18 = vadd.f32 %v724_v25, %v658_v4  ;;  %v1410_v30 = vmul.f32 %v2718_v31, %v3001_v41 }
 0x100   : > { %v1539_v0 = vadd.f32 %v1507_v22, %v1441_v40  ;;  %v476_v52 = vpop.f32.mrf.mxu0  ;;  %v1182_v11 = vadd.f32 %v1150_v61, %v1084_v48  ;;  %v888_v21 = vadd.f32 %v2710_v28, %v852_v55  ;;  %v822_v59 = vmul.f32 %v2660_v3, %v1473_v50 }
 0x101   : > { %v2317_v14 = vpop.eup %2316  ;;  %v477_v19 = vadd.f32 %v2569_v38, %v476_v52  ;;  %v1730_v58 = vmul.f32 0.044715, %v1602_v36  ;;  %605 = vst [vmem:[#allocation2 + $0x1c8] sm:$0xff] %v516_v26  ;;  %v1053_v38 = vmul.f32 %v2680_v15, %v3001_v41  ;;  %v3044_v32 = vmul.f32 0.5, %v1602_v36 }
 0x102   : > { %v3023_v27 = vadd.f32 %v1539_v0, %v1244_v51  ;;  %v1920_v47 = vadd.f32 1.0, %v2317_v14  ;;  %v3027_v1 = vld [vmem:[#allocation2 + $0xe7] sm:$0xff]  ;;  %v1245_v43 = vadd.f32 %v1181_v7, %v2996_v57  ;;  %v1246_v35 = vadd.f32 %v1182_v11, %v888_v21  ;;  %v3066_v14 = vld [vmem:[#allocation2 + $0x130] sm:$0xff] }
 0x103   : > { %592 = vst [vmem:[#allocation2 + $0xf0] sm:$0xff] %v477_v19  ;;  %v1762_v9 = vmul.f32 %v1730_v58, %v1602_v36  ;;  %v1344_v34 = vmul.f32 %v2701_v24, %v3027_v1  ;;  %v987_v29 = vmul.f32 %v2666_v6, %v3027_v1  ;;  %v3049_v39 = vadd.f32 %v2710_v28, %v853_v13  ;;  %v518_v56 = vpop.f32.mrf.mxu3  ;;  %v3068_v58 = vld [vmem:[#allocation2 + $0x131] sm:$0xff] }
 0x104   : > { %v2319_v5 = vpop.eup %2318  ;;  %v1731_v49 = vmul.f32 0.044715, %v3023_v27  ;;  %v1952_v17 = vmul.f32 %v1920_v47, %v1696_v20  ;;  %v854_v40 = vadd.f32 %v822_v59, %v756_v18  ;;  %v1411_v57 = vmul.f32 %v2718_v31, %v477_v19 }
 0x105   : > { %v1794_v12 = vmul.f32 %v1762_v9, %v1602_v36  ;;  %v1921_v23 = vadd.f32 1.0, %v2319_v5  ;;  %v1442_v2 = vadd.f32 %v1410_v30, %v1344_v34  ;;  %v1085_v48 = vadd.f32 %v1053_v38, %v987_v29 }
 0x106   : > { %v1763_v8 = vmul.f32 %v1731_v49, %v3023_v27  ;;  %2032 = vmatmul.f32.gmra.mxu1 %v1952_v17  ;;  %v1054_v45 = vmul.f32 %v2680_v15, %v477_v19  ;;  %v726_v52 = vmul.f32 %v2641_v60, %v477_v19  ;;  %v519_v61 = vadd.f32 %v3054_v42, %v518_v56 }
 0x107   : > { %v1826_v53 = vadd.f32 %v1794_v12, %v1602_v36  ;;  %v1953_v44 = vmul.f32 %v1921_v23, %v1697_v63  ;;  %v890_v19 = vadd.f32 %v2710_v28, %v854_v40  ;;  %v1699_v9 = vmul.f32 0.5, %v3023_v27 }
 0x108   : > { %v1795_v33 = vmul.f32 %v1763_v8, %v3023_v27  ;;  %v479_v22 = vpop.f32.mrf.mxu0  ;;  %606 = vst [vmem:[#allocation2 + $0x1d0] sm:$0xff] %v519_v61  ;;  %v3079_v10 = vmul.f32 %v2718_v31, %v3066_v14  ;;  %v3083_v11 = vmul.f32 %v2725_v37, %v3068_v58  ;;  %v659_v34 = vmul.f32 %v2650_v62, %v3027_v1 }
 0x109   : > { %v3057_v50 = vadd.f32 %v3054_v42, %v479_v22  ;;  %v1858_v20 = vmul.f32 0.7978846, %v1826_v53  ;;  %v725_v8 = vmul.f32 %v2641_v60, %v3001_v41  ;;  %v3092_v30 = vmul.f32 %v2680_v15, %v3066_v14 }
 0x10a   : > { %v1827_v51 = vadd.f32 %v1795_v33, %v3023_v27  ;;  %v1474_v46 = vld [vmem:[#allocation2 + $0xe9] sm:$0xff]  ;;  %v1475_v0 = vld [vmem:[#allocation2 + $0xf1] sm:$0xff] }
 0x10b   : > { %v1311_v36 = vld [vmem:[#allocation2 + $0xef] sm:$0xff]  ;;  %593 = vst [vmem:[#allocation2 + $0x108] sm:$0xff] %v3057_v50  ;;  %2320 = vtanh.f32 %v1858_v20  ;;  %v1508_v55 = vmul.f32 %v2725_v37, %v1474_v46  ;;  %v1509_v47 = vmul.f32 %v2725_v37, %v1475_v0  ;;  %v1151_v63 = vmul.f32 %v2685_v16, %v1474_v46 }
 0x10c   : > { %v1859_v54 = vmul.f32 0.7978846, %v1827_v51  ;;  %v1345_v4 = vmul.f32 %v2701_v24, %v1311_v36  ;;  %v988_v5 = vmul.f32 %v2666_v6, %v1311_v36  ;;  %v660_v49 = vmul.f32 %v2650_v62, %v1311_v36 }
 0x10d   : > { %v1540_v7 = vadd.f32 %v1508_v55, %v1442_v2  ;;  %v1152_v27 = vmul.f32 %v2685_v16, %v1475_v0  ;;  %v1183_v59 = vadd.f32 %v1151_v63, %v1085_v48  ;;  %v824_v33 = vmul.f32 %v2660_v3, %v1475_v0  ;;  %v521_v2 = vpop.f32.mrf.mxu3 }
 0x10e   : > { %2322 = vtanh.f32 %v1859_v54  ;;  %v1443_v25 = vadd.f32 %v1411_v57, %v1345_v4  ;;  %2035 = vmatmul.f32.gmra.mxu1 %v1953_v44  ;;  %v1086_v26 = vadd.f32 %v1054_v45, %v988_v5  ;;  %v758_v12 = vadd.f32 %v726_v52, %v660_v49  ;;  %v3134_v49 = vld [vmem:[#allocation2 + $0x147] sm:$0xff] }
 0x10f   : > { %v1604_v13 = vadd.f32 %v1540_v7, %v1245_v43  ;;  %v823_v43 = vmul.f32 %v2660_v3, %v1474_v46  ;;  %v757_v20 = vadd.f32 %v725_v8, %v659_v34  ;;  %v3106_v57 = vadd.f32 %v3054_v42, %v521_v2  ;;  %v3149_v34 = vld [vmem:[%s3831_s3 + $0x1] ss:$0 sm:$0xff]  ;;  %v3186_v2 = vld [vmem:[%s3831_s3 + $0x2] ss:$0 sm:$0xff] }
 0x110   : > { %v1541_v17 = vadd.f32 %v1509_v47, %v1443_v25  ;;  %v482_v18 = vpop.f32.mrf.mxu0  ;;  %v1184_v53 = vadd.f32 %v1152_v27, %v1086_v26  ;;  %v856_v44 = vadd.f32 %v824_v33, %v758_v12  ;;  %v1412_v46 = vmul.f32 %v2718_v31, %v3057_v50 }
 0x111   : > { %v2321_v21 = vpop.eup %2320  ;;  %v3095_v23 = vadd.f32 %v3054_v42, %v482_v18  ;;  %v1732_v29 = vmul.f32 0.044715, %v1604_v13  ;;  %v3113_v0 = vmul.f32 %v2685_v16, %v3068_v58  ;;  %v3115_v48 = vmul.f32 0.5, %v1604_v13  ;;  %607 = vst [vmem:[#allocation2 + $0x1e8] sm:$0xff] %v3106_v57 }
 0x112   : > { %v3097_v38 = vadd.f32 %v1541_v17, %v1246_v35  ;;  %v1922_v62 = vadd.f32 1.0, %v2321_v21  ;;  %v1312_v1 = vld [vmem:[#allocation2 + $0x107] sm:$0xff]  ;;  %v1248_v45 = vadd.f32 %v1184_v53, %v890_v19  ;;  %v855_v52 = vadd.f32 %v823_v43, %v757_v20 }
 0x113   : > { %594 = vst [vmem:[#allocation2 + $0x110] sm:$0xff] %v3095_v23  ;;  %v1764_v41 = vmul.f32 %v1732_v29, %v1604_v13  ;;  %v1346_v40 = vmul.f32 %v2701_v24, %v1312_v1  ;;  %v1413_v4 = vmul.f32 %v2718_v31, %v3095_v23  ;;  %v3123_v16 = vadd.f32 %v2710_v28, %v856_v44 }
 0x114   : > { %v2323_v60 = vpop.eup %2322  ;;  %v1733_v22 = vmul.f32 0.044715, %v3097_v38  ;;  %v1954_v35 = vmul.f32 %v1922_v62, %v3044_v32  ;;  %v1247_v32 = vadd.f32 %v1183_v59, %v3049_v39  ;;  %v1056_v63 = vmul.f32 %v2680_v15, %v3095_v23  ;;  %v3168_v62 = vld [vmem:[%s3831_s3 + $0x3] ss:$0 sm:$0xff] }
 0x115   : > { %v1923_v51 = vadd.f32 1.0, %v2323_v60  ;;  %v1796_v36 = vmul.f32 %v1764_v41, %v1604_v13  ;;  %v1444_v56 = vadd.f32 %v1412_v46, %v1346_v40  ;;  %v989_v7 = vmul.f32 %v2666_v6, %v1312_v1  ;;  %v3143_v6 = vld [vmem:[%s3831_s3] ss:$0 sm:$0xff]  ;;  %v524_v21 = vpop.f32.mrf.mxu3 }
 0x116   : > { %v1765_v3 = vmul.f32 %v1733_v22, %v3097_v38  ;;  %2038 = vmatmul.f32.gmra.mxu1 %v1954_v35  ;;  %v1055_v5 = vmul.f32 %v2680_v15, %v3057_v50  ;;  %v661_v26 = vmul.f32 %v3143_v6, %v1312_v1  ;;  %v727_v15 = vmul.f32 %v3149_v34, %v3057_v50 }
 0x117   : > { %v1828_v54 = vadd.f32 %v1796_v36, %v1604_v13  ;;  %v1955_v47 = vmul.f32 %v1923_v51, %v1699_v9  ;;  %v3136_v9 = vld [vmem:[#allocation2 + $0x148] sm:$0xff]  ;;  %v1350_v18 = vmul.f32 %v2701_v24, %v3134_v49  ;;  %v3161_v59 = vadd.f32 %v3054_v42, %v524_v21 }
 0x118   : > { %v1797_v55 = vmul.f32 %v1765_v3, %v3097_v38  ;;  %v485_v61 = vpop.f32.mrf.mxu0  ;;  %v1416_v27 = vmul.f32 %v2718_v31, %v3136_v9  ;;  %v1087_v1 = vadd.f32 %v1055_v5, %v989_v7  ;;  %v3178_v60 = vmul.f32 0.5, %v3097_v38  ;;  %v3196_v3 = vld [vmem:[%s3832_s4] ss:$0 sm:$0xff] }
 0x119   : > { %v3129_v39 = vadd.f32 %v3054_v42, %v485_v61  ;;  %v1860_v19 = vmul.f32 0.7978846, %v1828_v54  ;;  %608 = vst [vmem:[#allocation2 + $0x1f0] sm:$0xff] %v3161_v59  ;;  %v759_v44 = vadd.f32 %v727_v15, %v661_v26  ;;  %v891_v46 = vadd.f32 %v3196_v3, %v855_v52  ;;  %v3209_v61 = vld [vmem:[%s3831_s3 + $0x7] ss:$0 sm:$0xff] }
 0x11a   : > { %v1829_v25 = vadd.f32 %v1797_v55, %v3097_v38  ;;  %v1476_v28 = vld [vmem:[#allocation2 + $0x109] sm:$0xff]  ;;  %v3138_v17 = vld [vmem:[#allocation2 + $0x111] sm:$0xff]  ;;  %v3230_v15 = vld [vmem:[%s3831_s3 + $0x6] ss:$0 sm:$0xff] }
 0x11b   : > { %v1313_v13 = vld [vmem:[#allocation2 + $0x10f] sm:$0xff]  ;;  %595 = vst [vmem:[#allocation2 + $0x128] sm:$0xff] %v3129_v39  ;;  %2324 = vtanh.f32 %v1860_v19  ;;  %v1510_v8 = vmul.f32 %v2725_v37, %v1476_v28  ;;  %v1511_v50 = vmul.f32 %v2725_v37, %v3138_v17  ;;  %v825_v40 = vmul.f32 %v3186_v2, %v1476_v28 }
 0x11c   : > { %v1861_v12 = vmul.f32 0.7978846, %v1829_v25  ;;  %v1347_v29 = vmul.f32 %v2701_v24, %v1313_v13  ;;  %v990_v31 = vmul.f32 %v3168_v62, %v1313_v13  ;;  %v3174_v24 = vld [vmem:[%s3831_s3 + $0x5] ss:$0 sm:$0xff]  ;;  %v3191_v38 = vld [vmem:[#allocation2 + $0x149] sm:$0xff]  ;;  %v1448_v19 = vadd.f32 %v1416_v27, %v1350_v18 }
 0x11d   : > { %v1542_v53 = vadd.f32 %v1510_v8, %v1444_v56  ;;  %v1153_v43 = vmul.f32 %v3174_v24, %v1476_v28  ;;  %v1154_v22 = vmul.f32 %v3174_v24, %v3138_v17  ;;  %v1514_v54 = vmul.f32 %v2725_v37, %v3191_v38  ;;  %v527_v8 = vpop.f32.mrf.mxu3 }
 0x11e   : > { %2326 = vtanh.f32 %v1861_v12  ;;  %v1445_v33 = vadd.f32 %v1413_v4, %v1347_v29  ;;  %2041 = vmatmul.f32.gmra.mxu1 %v1955_v47  ;;  %v1088_v41 = vadd.f32 %v1056_v63, %v990_v31  ;;  %v1414_v47 = vmul.f32 %v3209_v61, %v3129_v39 }
 0x11f   : > { %v3189_v20 = vadd.f32 %v1542_v53, %v1247_v32  ;;  %v1185_v51 = vadd.f32 %v1153_v43, %v1087_v1  ;;  %v728_v32 = vmul.f32 %v3149_v34, %v3095_v23  ;;  %v857_v52 = vadd.f32 %v825_v40, %v759_v44  ;;  %v3220_v23 = vld [vmem:[%s3831_s3 + $0x4] ss:$0 sm:$0xff] }
 0x120   : > { %v1543_v35 = vadd.f32 %v1511_v50, %v1445_v33  ;;  %v1186_v36 = vadd.f32 %v1154_v22, %v1088_v41  ;;  %v662_v25 = vmul.f32 %v3143_v6, %v1313_v13  ;;  %v3239_v27 = vadd.f32 %v3054_v42, %v527_v8  ;;  %v3270_v8 = vld [vmem:[#allocation2 + $0x14f] sm:$0xff] }
 0x121   : > { %v2325_v55 = vpop.eup %2324  ;;  %v1734_v56 = vmul.f32 0.044715, %v3189_v20  ;;  %v1249_v21 = vadd.f32 %v1185_v51, %v891_v46  ;;  %v893_v33 = vadd.f32 %v3196_v3, %v857_v52 }
 0x122   : > { %v3204_v4 = vadd.f32 %v1543_v35, %v1248_v45  ;;  %v1924_v63 = vadd.f32 1.0, %v2325_v55  ;;  %v3213_v7 = vld [vmem:[#allocation2 + $0x12f] sm:$0xff]  ;;  %v3215_v37 = vld [vmem:[#allocation2 + $0x127] sm:$0xff]  ;;  %v1057_v45 = vmul.f32 %v3220_v23, %v3129_v39  ;;  %v1250_v13 = vadd.f32 %v1186_v36, %v3123_v16  ;;  %609 = vst [vmem:[#allocation2 + $0x208] sm:$0xff] %v3239_v27 }
 0x123   : > { %v1766_v28 = vmul.f32 %v1734_v56, %v3189_v20  ;;  %v1349_v12 = vmul.f32 %v3230_v15, %v3213_v7  ;;  %v3234_v29 = vld [vmem:[#allocation2 + $0x129] sm:$0xff]  ;;  %v1348_v50 = vmul.f32 %v3230_v15, %v3215_v37  ;;  %v3251_v16 = vld [vmem:[%s3831_s3 + $0x8] ss:$0 sm:$0xff]  ;;  %v991_v22 = vmul.f32 %v3168_v62, %v3215_v37 }
 0x124   : > { %v2327_v5 = vpop.eup %2326  ;;  %v1735_v26 = vmul.f32 0.044715, %v3204_v4  ;;  %v1956_v18 = vmul.f32 %v1924_v63, %v3115_v48  ;;  %v1512_v41 = vmul.f32 %v3251_v16, %v3234_v29  ;;  %v1155_v51 = vmul.f32 %v3174_v24, %v3234_v29 }
 0x125   : > { %v1798_v31 = vmul.f32 %v1766_v28, %v3189_v20  ;;  %v1447_v53 = vadd.f32 %v3079_v10, %v1349_v12  ;;  %v1925_v43 = vadd.f32 1.0, %v2327_v5  ;;  %v1446_v48 = vadd.f32 %v1414_v47, %v1348_v50  ;;  %v3280_v50 = vld [vmem:[#allocation2 + $0x150] sm:$0xff] }
 0x126   : > { %v1767_v1 = vmul.f32 %v1735_v26, %v3204_v4  ;;  %2044 = vmatmul.f32.gmra.mxu1 %v1956_v18  ;;  %v1089_v36 = vadd.f32 %v1057_v45, %v991_v22  ;;  %v760_v46 = vadd.f32 %v728_v32, %v662_v25  ;;  %v826_v55 = vmul.f32 %v3186_v2, %v3138_v17  ;;  %v530_v25 = vpop.f32.mrf.mxu3 }
 0x127   : > { %v1830_v10 = vadd.f32 %v1798_v31, %v3189_v20  ;;  %v1545_v35 = vadd.f32 %v3083_v11, %v1447_v53  ;;  %v1544_v44 = vadd.f32 %v1512_v41, %v1446_v48  ;;  %v992_v63 = vmul.f32 %v3168_v62, %v3213_v7 }
 0x128   : > { %v1799_v40 = vmul.f32 %v1767_v1, %v3204_v4  ;;  %v1187_v28 = vadd.f32 %v1155_v51, %v1089_v36  ;;  %v1546_v11 = vadd.f32 %v1514_v54, %v1448_v19  ;;  %v858_v26 = vadd.f32 %v826_v55, %v760_v46 }
 0x129   : > { %v1862_v56 = vmul.f32 0.7978846, %v1830_v10  ;;  %v1609_v52 = vadd.f32 %v1545_v35, %v1250_v13  ;;  %v3267_v5 = vadd.f32 %v1544_v44, %v1249_v21  ;;  %v1957_v12 = vmul.f32 %v1925_v43, %v3178_v60 }
 0x12a   : > { %v1831_v47 = vadd.f32 %v1799_v40, %v3204_v4  ;;  %v1251_v18 = vadd.f32 %v1187_v28, %v893_v33  ;;  %v3274_v13 = vadd.f32 %v3054_v42, %v530_v25  ;;  %v1351_v21 = vmul.f32 %v3230_v15, %v3270_v8  ;;  %v3289_v33 = vld [vmem:[#allocation2 + $0x151] sm:$0xff] }
 0x12b   : > { %2328 = vtanh.f32 %v1862_v56  ;;  %v1737_v32 = vmul.f32 0.044715, %v1609_v52  ;;  %v1736_v17 = vmul.f32 0.044715, %v3267_v5  ;;  %v894_v19 = vadd.f32 %v3196_v3, %v858_v26 }
 0x12c   : > { %v1863_v45 = vmul.f32 0.7978846, %v1831_v47  ;;  %v1090_v60 = vadd.f32 %v3092_v30, %v992_v63  ;;  %v1702_v31 = vmul.f32 0.5, %v3189_v20  ;;  %v3284_v53 = vadd.f32 %v1546_v11, %v1251_v18  ;;  %610 = vst [vmem:[#allocation2 + $0x210] sm:$0xff] %v3274_v13 }
 0x12d   : > { %v1769_v54 = vmul.f32 %v1737_v32, %v1609_v52  ;;  %v1768_v1 = vmul.f32 %v1736_v17, %v3267_v5  ;;  %v1417_v42 = vmul.f32 %v3209_v61, %v3280_v50  ;;  %v1515_v30 = vmul.f32 %v3251_v16, %v3289_v33 }
 0x12e   : > { %2330 = vtanh.f32 %v1863_v45  ;;  %2047 = vmatmul.f32.gmra.mxu1 %v1957_v12  ;;  %v1188_v48 = vadd.f32 %v3113_v0, %v1090_v60  ;;  %v663_v20 = vmul.f32 %v3143_v6, %v3215_v37  ;;  %v1703_v41 = vmul.f32 0.5, %v3204_v4 }
 0x12f   : > { %v1801_v43 = vmul.f32 %v1769_v54, %v1609_v52  ;;  %v1800_v22 = vmul.f32 %v1768_v1, %v3267_v5  ;;  %v1738_v10 = vmul.f32 0.044715, %v3284_v53  ;;  %v1449_v40 = vadd.f32 %v1417_v42, %v1351_v21  ;;  %v3315_v54 = vld [vmem:[#allocation2 + $0x167] sm:$0xff] }
 0x130   : > { %v1252_v44 = vadd.f32 %v1188_v48, %v894_v19  ;;  %v729_v36 = vmul.f32 %v3149_v34, %v3129_v39  ;;  %v827_v0 = vmul.f32 %v3186_v2, %v3234_v29  ;;  %v993_v28 = vmul.f32 %v3168_v62, %v3134_v49  ;;  %v3321_v42 = vld [vmem:[#allocation2 + $0x168] sm:$0xff] }
 0x131   : > { %v2329_v35 = vpop.eup %2328  ;;  %v1833_v51 = vadd.f32 %v1801_v43, %v1609_v52  ;;  %v1832_v55 = vadd.f32 %v1800_v22, %v3267_v5  ;;  %v1770_v37 = vmul.f32 %v1738_v10, %v3284_v53  ;;  %v1547_v4 = vadd.f32 %v1515_v30, %v1449_v40  ;;  %v3323_v43 = vld [vmem:[#allocation2 + $0x169] sm:$0xff] }
 0x132   : > { %v1926_v46 = vadd.f32 1.0, %v2329_v35  ;;  %v761_v63 = vadd.f32 %v729_v36, %v663_v20  ;;  %v1059_v11 = vmul.f32 %v3220_v23, %v3136_v9  ;;  %v1705_v17 = vmul.f32 0.5, %v1609_v52 }
 0x133   : > { %v1865_v47 = vmul.f32 0.7978846, %v1833_v51  ;;  %v1864_v12 = vmul.f32 0.7978846, %v1832_v55  ;;  %v1802_v29 = vmul.f32 %v1770_v37, %v3284_v53  ;;  %v3310_v45 = vadd.f32 %v1547_v4, %v1252_v44  ;;  %v3345_v37 = vld [vmem:[#allocation2 + $0x170] sm:$0xff] }
 0x134   : > { %v2331_v56 = vpop.eup %2330  ;;  %v1958_v26 = vmul.f32 %v1926_v46, %v1702_v31  ;;  %v859_v32 = vadd.f32 %v827_v0, %v761_v63  ;;  %v1091_v25 = vadd.f32 %v1059_v11, %v993_v28  ;;  %v1157_v21 = vmul.f32 %v3174_v24, %v3191_v38 }
 0x135   : > { %v1927_v39 = vadd.f32 1.0, %v2331_v56  ;;  %2332 = vtanh.f32 %v1865_v47  ;;  %v1834_v18 = vadd.f32 %v1802_v29, %v3284_v53  ;;  %v1739_v60 = vmul.f32 0.044715, %v3310_v45 }
 0x136   : > { %2050 = vmatmul.f32.gmra.mxu1 %v1958_v26  ;;  %2334 = vtanh.f32 %v1864_v12  ;;  %v895_v31 = vadd.f32 %v3196_v3, %v859_v32  ;;  %v1352_v1 = vmul.f32 %v3230_v15, %v3315_v54  ;;  %v1189_v48 = vadd.f32 %v1157_v21, %v1091_v25  ;;  %v3353_v12 = vld [vmem:[#allocation2 + $0x171] sm:$0xff] }
 0x137   : > { %v1959_v19 = vmul.f32 %v1927_v39, %v1703_v41  ;;  %v1866_v52 = vmul.f32 0.7978846, %v1834_v18  ;;  %v1418_v30 = vmul.f32 %v3209_v61, %v3321_v42  ;;  %v1516_v20 = vmul.f32 %v3251_v16, %v3323_v43 }
 0x138   : > { %v1771_v41 = vmul.f32 %v1739_v60, %v3310_v45  ;;  %v664_v22 = vmul.f32 %v3143_v6, %v3213_v7  ;;  %v730_v10 = vmul.f32 %v3149_v34, %v3066_v14  ;;  %v828_v40 = vmul.f32 %v3186_v2, %v3068_v58  ;;  %v3343_v14 = vld [vmem:[#allocation2 + $0x16f] sm:$0xff] }
 0x139   : > { %2336 = vtanh.f32 %v1866_v52  ;;  %v1253_v35 = vadd.f32 %v1189_v48, %v895_v31  ;;  %v1450_v51 = vadd.f32 %v1418_v30, %v1352_v1  ;;  %v994_v44 = vmul.f32 %v3168_v62, %v3270_v8 }
 0x13a   : > { %v1803_v0 = vmul.f32 %v1771_v41, %v3310_v45  ;;  %v762_v46 = vadd.f32 %v730_v10, %v664_v22  ;;  %v1060_v55 = vmul.f32 %v3220_v23, %v3280_v50  ;;  %v1158_v7 = vmul.f32 %v3174_v24, %v3289_v33  ;;  %v3366_v22 = vld [vmem:[#allocation2 + $0x187] sm:$0xff] }
 0x13b   : > { %v2333_v36 = vpop.eup %2332  ;;  %v1548_v56 = vadd.f32 %v1516_v20, %v1450_v51  ;;  %v1353_v47 = vmul.f32 %v3230_v15, %v3343_v14  ;;  %v1419_v63 = vmul.f32 %v3209_v61, %v3345_v37  ;;  %v1704_v28 = vmul.f32 0.5, %v3267_v5  ;;  %v3368_v10 = vld [vmem:[#allocation2 + $0x188] sm:$0xff] }
 0x13c   : > { %v2335_v58 = vpop.eup %2334  ;;  %v1929_v4 = vadd.f32 1.0, %v2333_v36  ;;  %v1835_v11 = vadd.f32 %v1803_v0, %v3310_v45  ;;  %v860_v26 = vadd.f32 %v828_v40, %v762_v46  ;;  %v1092_v39 = vadd.f32 %v1060_v55, %v994_v44  ;;  %v3377_v51 = vld [vmem:[#allocation2 + $0x189] sm:$0xff] }
 0x13d   : > { %v3355_v32 = vadd.f32 %v1548_v56, %v1253_v35  ;;  %v1451_v25 = vadd.f32 %v1419_v63, %v1353_v47  ;;  %v1517_v18 = vmul.f32 %v3251_v16, %v3353_v12  ;;  %v1928_v21 = vadd.f32 1.0, %v2335_v58 }
 0x13e   : > { %2053 = vmatmul.f32.gmra.mxu1 %v1959_v19  ;;  %v1961_v29 = vmul.f32 %v1929_v4, %v1705_v17  ;;  %v1867_v60 = vmul.f32 0.7978846, %v1835_v11  ;;  %v896_v31 = vadd.f32 %v3196_v3, %v860_v26  ;;  %v1190_v1 = vadd.f32 %v1158_v7, %v1092_v39 }
 0x13f   : > { %v2337_v5 = vpop.eup %2336  ;;  %v1706_v52 = vmul.f32 0.5, %v3284_v53  ;;  %v1740_v48 = vmul.f32 0.044715, %v3355_v32  ;;  %v1549_v30 = vadd.f32 %v1517_v18, %v1451_v25  ;;  %v665_v17 = vmul.f32 %v3143_v6, %v3134_v49 }
 0x140   : > { %2059 = vmatmul.f32.vlgmr.msra.gmra.mxu2 %v1961_v29  ;;  %v1930_v19 = vadd.f32 1.0, %v2337_v5  ;;  %2338 = vtanh.f32 %v1867_v60  ;;  %v1254_v20 = vadd.f32 %v1190_v1, %v896_v31  ;;  %v731_v41 = vmul.f32 %v3149_v34, %v3136_v9  ;;  %v3400_v60 = vld [vmem:[#allocation2 + $0x18f] sm:$0xff] }
 0x141   : > { %v1772_v40 = vmul.f32 %v1740_v48, %v3355_v32  ;;  %v829_v53 = vmul.f32 %v3186_v2, %v3191_v38  ;;  %v995_v35 = vmul.f32 %v3168_v62, %v3315_v54  ;;  %v1061_v49 = vmul.f32 %v3220_v23, %v3321_v42 }
 0x142   : > { %v1960_v44 = vmul.f32 %v1928_v21, %v1704_v28  ;;  %v3379_v36 = vadd.f32 %v1549_v30, %v1254_v20  ;;  %v763_v9 = vadd.f32 %v731_v41, %v665_v17  ;;  %v1159_v0 = vmul.f32 %v3174_v24, %v3323_v43 }
 0x143   : > { %v1804_v46 = vmul.f32 %v1772_v40, %v3355_v32  ;;  %v1093_v55 = vadd.f32 %v1061_v49, %v995_v35  ;;  %v1354_v38 = vmul.f32 %v3230_v15, %v3366_v22  ;;  %v1420_v7 = vmul.f32 %v3209_v61, %v3368_v10 }
 0x144   : > { %v1962_v58 = vmul.f32 %v1930_v19, %v1706_v52  ;;  %v1741_v4 = vmul.f32 0.044715, %v3379_v36  ;;  %v861_v56 = vadd.f32 %v829_v53, %v763_v9  ;;  %v1518_v47 = vmul.f32 %v3251_v16, %v3377_v51  ;;  %v3409_v19 = vld [vmem:[#allocation2 + $0x191] sm:$0xff] }
 0x145   : > { %v1836_v63 = vadd.f32 %v1804_v46, %v3355_v32  ;;  %v1191_v28 = vadd.f32 %v1159_v0, %v1093_v55  ;;  %v1452_v11 = vadd.f32 %v1420_v7, %v1354_v38  ;;  %v666_v26 = vmul.f32 %v3143_v6, %v3270_v8 }
 0x146   : > { %2056 = vmatmul.f32.gmra.mxu1 %v1960_v44  ;;  %v2339_v39 = vpop.eup %2338  ;;  %v1773_v29 = vmul.f32 %v1741_v4, %v3379_v36  ;;  %v897_v25 = vadd.f32 %v3196_v3, %v861_v56  ;;  %v732_v18 = vmul.f32 %v3149_v34, %v3280_v50  ;;  %v830_v21 = vmul.f32 %v3186_v2, %v3289_v33  ;;  %v3407_v50 = vld [vmem:[#allocation2 + $0x190] sm:$0xff] }
 0x147   : > { %v1931_v31 = vadd.f32 1.0, %v2339_v39  ;;  %v1868_v1 = vmul.f32 0.7978846, %v1836_v63  ;;  %v1550_v5 = vadd.f32 %v1518_v47, %v1452_v11  ;;  %v996_v8 = vmul.f32 %v3168_v62, %v3343_v14  ;;  %v3431_v63 = vld [vmem:[#allocation2 + $0x1a7] sm:$0xff] }
 0x148   : > { %2062 = vmatmul.f32.gmra.mxu2 %v1962_v58  ;;  %v1805_v52 = vmul.f32 %v1773_v29, %v3379_v36  ;;  %v1255_v48 = vadd.f32 %v1191_v28, %v897_v25  ;;  %v764_v30 = vadd.f32 %v732_v18, %v666_v26  ;;  %v1062_v17 = vmul.f32 %v3220_v23, %v3345_v37  ;;  %v3438_v11 = vld [vmem:[#allocation2 + $0x1a8] sm:$0xff] }
 0x149   : > { %v1707_v33 = vmul.f32 0.5, %v3310_v45  ;;  %2340 = vtanh.f32 %v1868_v1  ;;  %v1160_v20 = vmul.f32 %v3174_v24, %v3353_v12  ;;  %v1355_v41 = vmul.f32 %v3230_v15, %v3400_v60  ;;  %v3440_v26 = vld [vmem:[#allocation2 + $0x1a9] sm:$0xff] }
 0x14a   : > { %v1837_v40 = vadd.f32 %v1805_v52, %v3379_v36  ;;  %v3417_v53 = vadd.f32 %v1550_v5, %v1255_v48  ;;  %v862_v35 = vadd.f32 %v830_v21, %v764_v30  ;;  %v1094_v49 = vadd.f32 %v1062_v17, %v996_v8 }
 0x14b   : > { %v1421_v44 = vmul.f32 %v3209_v61, %v3407_v50  ;;  %v1519_v9 = vmul.f32 %v3251_v16, %v3409_v19  ;;  %v667_v45 = vmul.f32 %v3143_v6, %v3315_v54  ;;  %v733_v0 = vmul.f32 %v3149_v34, %v3321_v42 }
 0x14c   : > { %v1963_v46 = vmul.f32 %v1931_v31, %v1707_v33  ;;  %v1869_v55 = vmul.f32 0.7978846, %v1837_v40  ;;  %v1742_v38 = vmul.f32 0.044715, %v3417_v53  ;;  %v898_v7 = vadd.f32 %v3196_v3, %v862_v35 }
 0x14d   : > { %v1192_v58 = vadd.f32 %v1160_v20, %v1094_v49  ;;  %v1453_v4 = vadd.f32 %v1421_v44, %v1355_v41  ;;  %v765_v56 = vadd.f32 %v733_v0, %v667_v45  ;;  %v831_v47 = vmul.f32 %v3186_v2, %v3323_v43  ;;  %v3445_v43 = vld [vmem:[%s3834_s6] ss:$0 sm:$0xff] }
 0x14e   : > { %2342 = vtanh.f32 %v1869_v55  ;;  %v1774_v54 = vmul.f32 %v1742_v38, %v3417_v53  ;;  %v997_v42 = vmul.f32 %v3168_v62, %v3366_v22  ;;  %v1063_v28 = vmul.f32 %v3220_v23, %v3368_v10 }
 0x14f   : > { %v2341_v39 = vpop.eup %2340  ;;  %v1256_v29 = vadd.f32 %v1192_v58, %v898_v7  ;;  %v1551_v25 = vadd.f32 %v1519_v9, %v1453_v4  ;;  %v863_v18 = vadd.f32 %v831_v47, %v765_v56  ;;  %v1161_v21 = vmul.f32 %v3174_v24, %v3377_v51  ;;  %v3474_v7 = vld [vmem:[#allocation2 + $0x1af] sm:$0xff] }
 0x150   : > { %2065 = vmatmul.f32.gmra.mxu2 %v1963_v46  ;;  %v1932_v31 = vadd.f32 1.0, %v2341_v39  ;;  %v1806_v1 = vmul.f32 %v1774_v54, %v3417_v53  ;;  %v1095_v5 = vadd.f32 %v1063_v28, %v997_v42  ;;  %v1356_v8 = vmul.f32 %v3230_v15, %v3431_v63  ;;  %v3480_v56 = vld [vmem:[#allocation2 + $0x1b0] sm:$0xff] }
 0x151   : > { %v1615_v52 = vadd.f32 %v1551_v25, %v1256_v29  ;;  %v899_v48 = vadd.f32 %v3196_v3, %v863_v18  ;;  %v1422_v30 = vmul.f32 %v3209_v61, %v3438_v11  ;;  %v1520_v17 = vmul.f32 %v3251_v16, %v3440_v26  ;;  %v3482_v47 = vld [vmem:[#allocation2 + $0x1b1] sm:$0xff] }
 0x152   : > { %v1708_v20 = vmul.f32 0.5, %v3355_v32  ;;  %v1838_v41 = vadd.f32 %v1806_v1, %v3417_v53  ;;  %v1193_v40 = vadd.f32 %v1161_v21, %v1095_v5  ;;  %v668_v35 = vmul.f32 %v3143_v6, %v3343_v14 }
 0x153   : > { %v2015_v33 = vpop.f32.mrf.mxu1  ;;  %v1709_v44 = vmul.f32 0.5, %v3379_v36  ;;  %v1743_v9 = vmul.f32 0.044715, %v1615_v52  ;;  %v1454_v45 = vadd.f32 %v1422_v30, %v1356_v8  ;;  %v734_v38 = vmul.f32 %v3149_v34, %v3345_v37 }
 0x154   : > { %v2016_v49 = vadd.f32 %v3445_v43, %v2015_v33  ;;  %v2343_v0 = vpop.eup %2342  ;;  %v1870_v46 = vmul.f32 0.7978846, %v1838_v41  ;;  %v1257_v55 = vadd.f32 %v1193_v40, %v899_v48  ;;  %v832_v32 = vmul.f32 %v3186_v2, %v3353_v12 }
 0x155   : > { %v1964_v14 = vmul.f32 %v1932_v31, %v1708_v20  ;;  %v1775_v58 = vmul.f32 %v1743_v9, %v1615_v52  ;;  %v1552_v4 = vadd.f32 %v1520_v17, %v1454_v45  ;;  %v998_v36 = vmul.f32 %v3168_v62, %v3400_v60 }
 0x156   : > { %2111 = vst.msk [vmem:[%s3462_s26] sm:$0xff] %vm323_vm0, %v2016_v49  ;;  %2344 = vtanh.f32 %v1870_v46  ;;  %v766_v54 = vadd.f32 %v734_v38, %v668_v35  ;;  %v1064_v37 = vmul.f32 %v3220_v23, %v3407_v50  ;;  %v1162_v12 = vmul.f32 %v3174_v24, %v3409_v19 }
 0x157   : > { %v1933_v42 = vadd.f32 1.0, %v2343_v0  ;;  %v1807_v28 = vmul.f32 %v1775_v58, %v1615_v52  ;;  %v1616_v39 = vadd.f32 %v1552_v4, %v1257_v55  ;;  %v1357_v29 = vmul.f32 %v3230_v15, %v3474_v7 }
 0x158   : > { %2068 = vmatmul.f32.gmra.mxu2 %v1964_v14  ;;  %v864_v25 = vadd.f32 %v832_v32, %v766_v54  ;;  %v1096_v18 = vadd.f32 %v1064_v37, %v998_v36  ;;  %v1423_v21 = vmul.f32 %v3209_v61, %v3480_v56  ;;  %v1521_v31 = vmul.f32 %v3251_v16, %v3482_v47  ;;  %v3511_v14 = vld [vmem:[#allocation2 + $0x1e9] sm:$0xff] }
 0x159   : > { %v1710_v1 = vmul.f32 0.5, %v3417_v53  ;;  %v3495_v5 = vmul.f32 0.5, %v1615_v52  ;;  %v1839_v8 = vadd.f32 %v1807_v28, %v1615_v52  ;;  %v1744_v48 = vmul.f32 0.044715, %v1616_v39  ;;  %v3503_v52 = vld [vmem:[#allocation2 + $0x1e7] sm:$0xff] }
 0x15a   : > { %v900_v17 = vadd.f32 %v3196_v3, %v864_v25  ;;  %v1194_v33 = vadd.f32 %v1162_v12, %v1096_v18  ;;  %v1455_v20 = vadd.f32 %v1423_v21, %v1357_v29  ;;  %v669_v41 = vmul.f32 %v3143_v6, %v3366_v22  ;;  %v3523_v54 = vld [vmem:[#allocation2 + $0x209] sm:$0xff] }
 0x15b   : > { %v2018_v30 = vpop.f32.mrf.mxu1  ;;  %v1871_v35 = vmul.f32 0.7978846, %v1839_v8  ;;  %v1776_v49 = vmul.f32 %v1744_v48, %v1616_v39  ;;  %v735_v53 = vmul.f32 %v3149_v34, %v3368_v10  ;;  %v1965_v45 = vmul.f32 %v1933_v42, %v1709_v44  ;;  %v3513_v10 = vld [vmem:[#allocation2 + $0x207] sm:$0xff] }
 0x15c   : > { %v2019_v40 = vadd.f32 %v3445_v43, %v2018_v30  ;;  %v2345_v9 = vpop.eup %2344  ;;  %v1258_v0 = vadd.f32 %v1194_v33, %v900_v17  ;;  %v1553_v46 = vadd.f32 %v1521_v31, %v1455_v20  ;;  %v833_v55 = vmul.f32 %v3186_v2, %v3377_v51  ;;  %v1330_v44 = vld [vmem:[#allocation2 + $0x227] sm:$0xff] }
 0x15d   : > { %v1934_v38 = vadd.f32 1.0, %v2345_v9  ;;  %2346 = vtanh.f32 %v1871_v35  ;;  %v1808_v22 = vmul.f32 %v1776_v49, %v1616_v39  ;;  %v675_v32 = vmul.f32 %v3143_v6, %v3503_v52  ;;  %v1494_v37 = vld [vmem:[#allocation2 + $0x229] sm:$0xff] }
 0x15e   : > { %2112 = vst.msk [vmem:[%s3462_s26 + $0x8] sm:$0xff] %vm323_vm0, %v2019_v40  ;;  %v741_v58 = vmul.f32 %v3149_v34, %v3106_v57  ;;  %v839_v4 = vmul.f32 %v3186_v2, %v3511_v14  ;;  %v1005_v51 = vmul.f32 %v3168_v62, %v3513_v10  ;;  %v1071_v36 = vmul.f32 %v3220_v23, %v3239_v27  ;;  %v2379_v18 = vld [vmem:[#allocation2 + $0x8] sm:$0xff] }
 0x15f   : > { %v1840_v12 = vadd.f32 %v1808_v22, %v1616_v39  ;;  %v1169_v42 = vmul.f32 %v3174_v24, %v3523_v54  ;;  %v1364_v28 = vmul.f32 %v3230_v15, %v1330_v44  ;;  %v767_v57 = vadd.f32 %v735_v53, %v669_v41 }
 0x160   : > { %2071 = vmatmul.f32.gmra.mxu2 %v1965_v45  ;;  %v773_v29 = vadd.f32 %v741_v58, %v675_v32  ;;  %v1103_v25 = vadd.f32 %v1071_v36, %v1005_v51  ;;  %v1430_v21 = vmul.f32 %v2379_v18, %v3209_v61  ;;  %v1528_v31 = vmul.f32 %v3251_v16, %v1494_v37  ;;  %v3556_v58 = vld [vmem:[#allocation2 + $0x20f] sm:$0xff]  ;;  %v3568_v18 = vld [vmem:[#allocation2 + $0x1c7] sm:$0xff] }
 0x161   : > { %v3530_v8 = vmul.f32 0.5, %v1616_v39  ;;  %v1872_v27 = vmul.f32 0.7978846, %v1840_v12  ;;  %v3532_v48 = vadd.f32 %v1553_v46, %v1258_v0  ;;  %v999_v30 = vmul.f32 %v3168_v62, %v3431_v63  ;;  %v3539_v0 = vld [vmem:[#allocation2 + $0x1ef] sm:$0xff] }
 0x162   : > { %v1966_v33 = vmul.f32 %v1934_v38, %v1710_v1  ;;  %v871_v20 = vadd.f32 %v839_v4, %v773_v29  ;;  %v1201_v41 = vadd.f32 %v1169_v42, %v1103_v25  ;;  %v1462_v40 = vadd.f32 %v1430_v21, %v1364_v28  ;;  %v3541_v46 = vld [vmem:[#allocation2 + $0x1f1] sm:$0xff] }
 0x163   : > { %v2021_v17 = vpop.f32.mrf.mxu1  ;;  %v2347_v35 = vpop.eup %2346  ;;  %2348 = vtanh.f32 %v1872_v27  ;;  %v1745_v53 = vmul.f32 0.044715, %v3532_v48  ;;  %v865_v39 = vadd.f32 %v833_v55, %v767_v57  ;;  %v1065_v1 = vmul.f32 %v3220_v23, %v3438_v11  ;;  %v1331_v4 = vld [vmem:[#allocation2 + $0x22f] sm:$0xff] }
 0x164   : > { %v2022_v49 = vadd.f32 %v3445_v43, %v2021_v17  ;;  %v907_v9 = vadd.f32 %v3196_v3, %v871_v20  ;;  %v1560_v45 = vadd.f32 %v1528_v31, %v1462_v40  ;;  %v1163_v38 = vmul.f32 %v3174_v24, %v3440_v26  ;;  %v3562_v42 = vld [vmem:[#allocation2 + $0x211] sm:$0xff] }
 0x165   : > { %v1777_v22 = vmul.f32 %v1745_v53, %v3532_v48  ;;  %v676_v55 = vmul.f32 %v3143_v6, %v3539_v0  ;;  %v742_v32 = vmul.f32 %v3149_v34, %v3161_v59  ;;  %v840_v44 = vmul.f32 %v3186_v2, %v3541_v46  ;;  %v1495_v28 = vld [vmem:[#allocation2 + $0x231] sm:$0xff] }
 0x166   : > { %2113 = vst.msk [vmem:[%s3462_s26 + $0x10] sm:$0xff] %vm323_vm0, %v2022_v49  ;;  %v1935_v51 = vadd.f32 1.0, %v2347_v35  ;;  %v1265_v36 = vadd.f32 %v1201_v41, %v907_v9  ;;  %v1006_v37 = vmul.f32 %v3168_v62, %v3556_v58  ;;  %v1072_v12 = vmul.f32 %v3220_v23, %v3274_v13  ;;  %v3573_v49 = vld [vmem:[#allocation2 + $0x1c8] sm:$0xff] }
 0x167   : > { %v1809_v59 = vmul.f32 %v1777_v22, %v3532_v48  ;;  %v774_v57 = vadd.f32 %v742_v32, %v676_v55  ;;  %v1170_v29 = vmul.f32 %v3174_v24, %v3562_v42  ;;  %v1365_v25 = vmul.f32 %v3230_v15, %v1331_v4  ;;  %v3578_v32 = vld [vmem:[#allocation2 + $0x1c9] sm:$0xff] }
 0x168   : > { %2074 = vmatmul.f32.gmra.mxu2 %v1966_v33  ;;  %v1624_v31 = vadd.f32 %v1560_v45, %v1265_v36  ;;  %v1104_v27 = vadd.f32 %v1072_v12, %v1006_v37  ;;  %v1529_v17 = vmul.f32 %v3251_v16, %v1495_v28  ;;  %v1097_v20 = vadd.f32 %v1065_v1, %v999_v30 }
 0x169   : > { %v2349_v13 = vpop.eup %2348  ;;  %v1841_v41 = vadd.f32 %v1809_v59, %v3532_v48  ;;  %v872_v40 = vadd.f32 %v840_v44, %v774_v57  ;;  %v1463_v33 = vadd.f32 %v1430_v21, %v1365_v25  ;;  %v901_v35 = vadd.f32 %v3196_v3, %v865_v39 }
 0x16a   : > { %v1967_v9 = vmul.f32 %v1935_v51, %v3495_v5  ;;  %v1752_v22 = vmul.f32 0.044715, %v1624_v31  ;;  %v1202_v55 = vadd.f32 %v1170_v29, %v1104_v27  ;;  %v1358_v45 = vmul.f32 %v3230_v15, %v3568_v18 }
 0x16b   : > { %v2024_v53 = vpop.f32.mrf.mxu1  ;;  %v1873_v1 = vmul.f32 0.7978846, %v1841_v41  ;;  %v908_v21 = vadd.f32 %v3196_v3, %v872_v40  ;;  %v1561_v44 = vadd.f32 %v1529_v17, %v1463_v33  ;;  %v1936_v39 = vadd.f32 1.0, %v2349_v13  ;;  %v3606_v33 = vld [vmem:[#allocation2 + $0x1d1] sm:$0xff] }
 0x16c   : > { %v2025_v30 = vadd.f32 %v3445_v43, %v2024_v53  ;;  %v1784_v4 = vmul.f32 %v1752_v22, %v1624_v31  ;;  %v1195_v36 = vadd.f32 %v1163_v38, %v1097_v20  ;;  %v1424_v37 = vmul.f32 %v3209_v61, %v3573_v49  ;;  %v3592_v38 = vld [vmem:[#allocation2 + $0x1cf] sm:$0xff] }
 0x16d   : > { %2350 = vtanh.f32 %v1873_v1  ;;  %v1266_v5 = vadd.f32 %v1202_v55, %v908_v21  ;;  %v1522_v51 = vmul.f32 %v3251_v16, %v3578_v32  ;;  %v670_v12 = vmul.f32 %v3143_v6, %v3400_v60  ;;  %v3602_v20 = vld [vmem:[#allocation2 + $0x1d0] sm:$0xff] }
 0x16e   : > { %2114 = vst.msk [vmem:[%s3462_s26 + $0x18] sm:$0xff] %vm323_vm0, %v2025_v30  ;;  %v1816_v28 = vmul.f32 %v1784_v4, %v1624_v31  ;;  %v1259_v59 = vadd.f32 %v1195_v36, %v901_v35  ;;  %v1456_v57 = vadd.f32 %v1424_v37, %v1358_v45  ;;  %v736_v29 = vmul.f32 %v3149_v34, %v3407_v50 }
 0x16f   : > { %v3594_v25 = vadd.f32 %v1561_v44, %v1266_v5  ;;  %v834_v27 = vmul.f32 %v3186_v2, %v3409_v19  ;;  %v1000_v17 = vmul.f32 %v3168_v62, %v3474_v7  ;;  %v1066_v60 = vmul.f32 %v3220_v23, %v3480_v56 }
 0x170   : > { %2077 = vmatmul.f32.gmra.mxu2 %v1967_v9  ;;  %v1848_v13 = vadd.f32 %v1816_v28, %v1624_v31  ;;  %v1554_v41 = vadd.f32 %v1522_v51, %v1456_v57  ;;  %v768_v40 = vadd.f32 %v736_v29, %v670_v12  ;;  %v1164_v50 = vmul.f32 %v3174_v24, %v3482_v47 }
 0x171   : > { %v1713_v35 = vmul.f32 0.5, %v3532_v48  ;;  %v1753_v19 = vmul.f32 0.044715, %v3594_v25  ;;  %v1098_v53 = vadd.f32 %v1066_v60, %v1000_v17  ;;  %v1359_v9 = vmul.f32 %v3230_v15, %v3592_v38 }
 0x172   : > { %v1880_v55 = vmul.f32 0.7978846, %v1848_v13  ;;  %v3612_v45 = vadd.f32 %v1554_v41, %v1259_v59  ;;  %v866_v30 = vadd.f32 %v834_v27, %v768_v40  ;;  %v1425_v1 = vmul.f32 %v3209_v61, %v3602_v20 }
 0x173   : > { %v2027_v22 = vpop.f32.mrf.mxu1  ;;  %v2351_v21 = vpop.eup %2350  ;;  %v1785_v48 = vmul.f32 %v1753_v19, %v3594_v25  ;;  %v1196_v4 = vadd.f32 %v1164_v50, %v1098_v53  ;;  %v1523_v36 = vmul.f32 %v3251_v16, %v3606_v33  ;;  %v1968_v37 = vmul.f32 %v1936_v39, %v3530_v8  ;;  %v3633_v39 = vld [vmem:[#allocation2 + $0x1e8] sm:$0xff] }
 0x174   : > { %v2028_v44 = vadd.f32 %v3445_v43, %v2027_v22  ;;  %v1720_v5 = vmul.f32 0.5, %v1624_v31  ;;  %2352 = vtanh.f32 %v1880_v55  ;;  %v1746_v51 = vmul.f32 0.044715, %v3612_v45 }
 0x175   : > { %v1817_v12 = vmul.f32 %v1785_v48, %v3594_v25  ;;  %v902_v28 = vadd.f32 %v3196_v3, %v866_v30  ;;  %v1457_v59 = vadd.f32 %v1425_v1, %v1359_v9  ;;  %v671_v57 = vmul.f32 %v3143_v6, %v3431_v63 }
 0x176   : > { %2115 = vst.msk [vmem:[%s3462_s26 + $0x20] sm:$0xff] %vm323_vm0, %v2028_v44  ;;  %v1937_v29 = vadd.f32 1.0, %v2351_v21  ;;  %v1778_v27 = vmul.f32 %v1746_v51, %v3612_v45  ;;  %v737_v8 = vmul.f32 %v3149_v34, %v3438_v11  ;;  %v835_v31 = vmul.f32 %v3186_v2, %v3440_v26 }
 0x177   : > { %v1849_v17 = vadd.f32 %v1817_v12, %v3594_v25  ;;  %v1260_v60 = vadd.f32 %v1196_v4, %v902_v28  ;;  %v1555_v13 = vadd.f32 %v1523_v36, %v1457_v59  ;;  %v1001_v41 = vmul.f32 %v3168_v62, %v3568_v18 }
 0x178   : > { %2080 = vmatmul.f32.gmra.mxu2 %v1968_v37  ;;  %v1810_v63 = vmul.f32 %v1778_v27, %v3612_v45  ;;  %v769_v40 = vadd.f32 %v737_v8, %v671_v57  ;;  %v1067_v50 = vmul.f32 %v3220_v23, %v3573_v49  ;;  %v1165_v11 = vmul.f32 %v3174_v24, %v3578_v32 }
 0x179   : > { %v1881_v26 = vmul.f32 0.7978846, %v1849_v17  ;;  %v3643_v19 = vadd.f32 %v1555_v13, %v1260_v60  ;;  %v1360_v53 = vmul.f32 %v3230_v15, %v3503_v52  ;;  %v1426_v9 = vmul.f32 %v3209_v61, %v3633_v39  ;;  %v3664_v17 = vld [vmem:[#allocation2 + $0x1f0] sm:$0xff] }
 0x17a   : > { %v2353_v22 = vpop.eup %2352  ;;  %v1969_v30 = vmul.f32 %v1937_v29, %v1713_v35  ;;  %v1842_v1 = vadd.f32 %v1810_v63, %v3612_v45  ;;  %v867_v21 = vadd.f32 %v835_v31, %v769_v40  ;;  %v1099_v44 = vadd.f32 %v1067_v50, %v1001_v41 }
 0x17b   : > { %v2030_v55 = vpop.f32.mrf.mxu1  ;;  %v1944_v4 = vadd.f32 1.0, %v2353_v22  ;;  %2354 = vtanh.f32 %v1881_v26  ;;  %v1524_v36 = vmul.f32 %v3251_v16, %v3511_v14  ;;  %v1747_v51 = vmul.f32 0.044715, %v3643_v19  ;;  %v2380_v22 = vld [vmem:[%s3831_s3] ss:$0 sm:$0xff] }
 0x17c   : > { %v2031_v48 = vadd.f32 %v3445_v43, %v2030_v55  ;;  %v1874_v37 = vmul.f32 0.7978846, %v1842_v1  ;;  %v903_v12 = vadd.f32 %v3196_v3, %v867_v21  ;;  %v1197_v28 = vadd.f32 %v1165_v11, %v1099_v44 }
 0x17d   : > { %v1976_v35 = vmul.f32 %v1944_v4, %v1720_v5  ;;  %v1458_v59 = vadd.f32 %v1426_v9, %v1360_v53  ;;  %v672_v57 = vmul.f32 %v3143_v6, %v3474_v7  ;;  %v738_v29 = vmul.f32 %v3149_v34, %v3480_v56 }
 0x17e   : > { %2116 = vst.msk [vmem:[%s3462_s26 + $0x28] sm:$0xff] %vm323_vm0, %v2031_v48  ;;  %2356 = vtanh.f32 %v1874_v37  ;;  %v1779_v27 = vmul.f32 %v1747_v51, %v3643_v19  ;;  %v1261_v8 = vadd.f32 %v1197_v28, %v903_v12  ;;  %v836_v31 = vmul.f32 %v3186_v2, %v3482_v47  ;;  %v1394_v51 = vld [vmem:[#allocation2 + $0x208] sm:$0xff] }
 0x17f   : > { %2104 = vmatmul.f32.vlgmr.msrb.gmra.mxu3 %v1976_v35  ;;  %v1721_v5 = vmul.f32 0.5, %v3594_v25  ;;  %v1556_v60 = vadd.f32 %v1524_v36, %v1458_v59  ;;  %v770_v13 = vadd.f32 %v738_v29, %v672_v57  ;;  %v1002_v6 = vmul.f32 %v3168_v62, %v3592_v38  ;;  %v2383_v35 = vld [vmem:[%s3831_s3 + $0x3] ss:$0 sm:$0xff] }
 0x180   : > { %2083 = vmatmul.f32.gmra.mxu2 %v1969_v30  ;;  %v1811_v34 = vmul.f32 %v1779_v27, %v3643_v19  ;;  %v1068_v7 = vmul.f32 %v3220_v23, %v3602_v20  ;;  %v1166_v56 = vmul.f32 %v3174_v24, %v3606_v33  ;;  %v1361_v2 = vmul.f32 %v3230_v15, %v3539_v0 }
 0x181   : > { %v2355_v47 = vpop.eup %2354  ;;  %v1714_v41 = vmul.f32 0.5, %v3612_v45  ;;  %v3677_v25 = vadd.f32 %v1556_v60, %v1261_v8  ;;  %v868_v63 = vadd.f32 %v836_v31, %v770_v13  ;;  %v1427_v62 = vmul.f32 %v3209_v61, %v3664_v17 }
 0x182   : > { %v1945_v50 = vadd.f32 1.0, %v2355_v47  ;;  %v1843_v11 = vadd.f32 %v1811_v34, %v3643_v19  ;;  %v1100_v26 = vadd.f32 %v1068_v7, %v1002_v6  ;;  %v1525_v24 = vmul.f32 %v3251_v16, %v3541_v46  ;;  %v2386_v47 = vld [vmem:[%s3832_s4] ss:$0 sm:$0xff] }
 0x183   : > { %v2033_v40 = vpop.f32.mrf.mxu1  ;;  %v1748_v9 = vmul.f32 0.044715, %v3677_v25  ;;  %v904_v45 = vadd.f32 %v3196_v3, %v868_v63  ;;  %v673_v61 = vmul.f32 %v2380_v22, %v3568_v18  ;;  %v1459_v44 = vadd.f32 %v1427_v62, %v1361_v2  ;;  %v2381_v3 = vld [vmem:[%s3831_s3 + $0x1] ss:$0 sm:$0xff]  ;;  %v2382_v18 = vld [vmem:[%s3831_s3 + $0x2] ss:$0 sm:$0xff] }
 0x184   : > { %v2034_v53 = vadd.f32 %v3445_v43, %v2033_v40  ;;  %v2357_v55 = vpop.eup %2356  ;;  %v1977_v30 = vmul.f32 %v1945_v50, %v1721_v5  ;;  %v1875_v1 = vmul.f32 0.7978846, %v1843_v11  ;;  %v1198_v21 = vadd.f32 %v1166_v56, %v1100_v26  ;;  %v1395_v50 = vld [vmem:[#allocation2 + $0x210] sm:$0xff] }
 0x185   : > { %v1938_v48 = vadd.f32 1.0, %v2357_v55  ;;  %v1780_v4 = vmul.f32 %v1748_v9, %v3677_v25  ;;  %v739_v36 = vmul.f32 %v2381_v3, %v3573_v49  ;;  %v837_v37 = vmul.f32 %v2382_v18, %v3578_v32  ;;  %v2384_v32 = vld [vmem:[%s3831_s3 + $0x5] ss:$0 sm:$0xff]  ;;  %v2387_v9 = vld [vmem:[%s3831_s3 + $0x4] ss:$0 sm:$0xff] }
 0x186   : > { %2117 = vst.msk [vmem:[%s3462_s26 + $0x30] sm:$0xff] %vm323_vm0, %v2034_v53  ;;  %2358 = vtanh.f32 %v1875_v1  ;;  %v1262_v12 = vadd.f32 %v1198_v21, %v904_v45  ;;  %v1557_v28 = vadd.f32 %v1525_v24, %v1459_v44  ;;  %v1003_v59 = vmul.f32 %v2383_v35, %v3503_v52  ;;  %v2385_v52 = vld [vmem:[%s3831_s3 + $0x7] ss:$0 sm:$0xff]  ;;  %v2389_v44 = vld [vmem:[%s3831_s3 + $0x8] ss:$0 sm:$0xff] }
 0x187   : > { %2107 = vmatmul.f32.gmra.mxu3 %v1977_v30  ;;  %v1970_v57 = vmul.f32 %v1938_v48, %v1714_v41  ;;  %v1812_v49 = vmul.f32 %v1780_v4, %v3677_v25  ;;  %v771_v29 = vadd.f32 %v739_v36, %v673_v61  ;;  %v1069_v27 = vmul.f32 %v3220_v23, %v3633_v39  ;;  %v2388_v61 = vld [vmem:[%s3831_s3 + $0x6] ss:$0 sm:$0xff] }
 0x188   : > { %v3709_v8 = vadd.f32 %v1557_v28, %v1262_v12  ;;  %v1167_v31 = vmul.f32 %v2384_v32, %v3511_v14  ;;  %v1362_v5 = vmul.f32 %v3230_v15, %v3513_v10  ;;  %v1428_v60 = vmul.f32 %v2385_v52, %v1394_v51 }
 0x189   : > { %2086 = vmatmul.f32.gmra.mxu2 %v1970_v57  ;;  %v1844_v13 = vadd.f32 %v1812_v49, %v3677_v25  ;;  %v869_v23 = vadd.f32 %v837_v37, %v771_v29  ;;  %v1101_v39 = vadd.f32 %v1069_v27, %v1003_v59  ;;  %v1526_v6 = vmul.f32 %v3251_v16, %v3523_v54 }
 0x18a   : > { %v1715_v14 = vmul.f32 0.5, %v3643_v19  ;;  %v1749_v7 = vmul.f32 0.044715, %v3709_v8  ;;  %v1460_v15 = vadd.f32 %v1428_v60, %v1362_v5  ;;  %v674_v10 = vmul.f32 %v2380_v22, %v3592_v38 }
 0x18b   : > { %v2036_v34 = vpop.f32.mrf.mxu1  ;;  %v1876_v2 = vmul.f32 0.7978846, %v1844_v13  ;;  %v905_v41 = vadd.f32 %v2386_v47, %v869_v23  ;;  %v1199_v63 = vadd.f32 %v1167_v31, %v1101_v39  ;;  %v740_v19 = vmul.f32 %v2381_v3, %v3602_v20 }
 0x18c   : > { %v2037_v56 = vadd.f32 %v3445_v43, %v2036_v34  ;;  %v2359_v62 = vpop.eup %2358  ;;  %v1781_v16 = vmul.f32 %v1749_v7, %v3709_v8  ;;  %v1558_v54 = vadd.f32 %v1526_v6, %v1460_v15  ;;  %v838_v40 = vmul.f32 %v2382_v18, %v3606_v33 }
 0x18d   : > { %v1939_v38 = vadd.f32 1.0, %v2359_v62  ;;  %2360 = vtanh.f32 %v1876_v2  ;;  %v1263_v11 = vadd.f32 %v1199_v63, %v905_v41  ;;  %v1004_v26 = vmul.f32 %v2383_v35, %v3539_v0 }
 0x18e   : > { %2118 = vst.msk [vmem:[%s3462_s26 + $0x38] sm:$0xff] %vm323_vm0, %v2037_v56  ;;  %v1813_v24 = vmul.f32 %v1781_v16, %v3709_v8  ;;  %v772_v53 = vadd.f32 %v740_v19, %v674_v10  ;;  %v1070_v45 = vmul.f32 %v2387_v9, %v3664_v17  ;;  %v1168_v20 = vmul.f32 %v2384_v32, %v3541_v46 }
 0x18f   : > { %v1971_v33 = vmul.f32 %v1939_v38, %v1715_v14  ;;  %v1622_v22 = vadd.f32 %v1558_v54, %v1263_v11  ;;  %v1363_v55 = vmul.f32 %v2388_v61, %v3556_v58  ;;  %v1429_v0 = vmul.f32 %v2385_v52, %v1395_v50 }
 0x190   : > { %v1845_v30 = vadd.f32 %v1813_v24, %v3709_v8  ;;  %v870_v1 = vadd.f32 %v838_v40, %v772_v53  ;;  %v1102_v21 = vadd.f32 %v1070_v45, %v1004_v26  ;;  %v1527_v17 = vmul.f32 %v2389_v44, %v3562_v42 }
 0x191   : > { %2089 = vmatmul.f32.gmra.mxu2 %v1971_v33  ;;  %v1750_v46 = vmul.f32 0.044715, %v1622_v22  ;;  %v1461_v48 = vadd.f32 %v1429_v0, %v1363_v55  ;;  %v1716_v51 = vmul.f32 0.5, %v3677_v25  ;;  %v1717_v60 = vmul.f32 0.5, %v3709_v8 }
 0x192   : > { %v1877_v3 = vmul.f32 0.7978846, %v1845_v30  ;;  %v906_v36 = vadd.f32 %v2386_v47, %v870_v1  ;;  %v1200_v18 = vadd.f32 %v1168_v20, %v1102_v21  ;;  %v1718_v10 = vmul.f32 0.5, %v1622_v22 }
 0x193   : > { %v2039_v4 = vpop.f32.mrf.mxu1  ;;  %v2361_v58 = vpop.eup %2360  ;;  %v1782_v12 = vmul.f32 %v1750_v46, %v1622_v22  ;;  %v1559_v28 = vadd.f32 %v1527_v17, %v1461_v48 }
 0x194   : > { %v2040_v37 = vadd.f32 %v3445_v43, %v2039_v4  ;;  %v1940_v35 = vadd.f32 1.0, %v2361_v58  ;;  %2362 = vtanh.f32 %v1877_v3  ;;  %v1264_v59 = vadd.f32 %v1200_v18, %v906_v36 }
 0x195   : > { %v1814_v42 = vmul.f32 %v1782_v12, %v1622_v22 }
 0x196   : > { %2119 = vst.msk [vmem:[%s3462_s26 + $0x40] sm:$0xff] %vm323_vm0, %v2040_v37  ;;  %v1623_v57 = vadd.f32 %v1559_v28, %v1264_v59  ;;  %v1972_v49 = vmul.f32 %v1940_v35, %v1716_v51 }
 0x197   : > { %v1846_v29 = vadd.f32 %v1814_v42, %v1622_v22 }
 0x198   : > { %v1751_v27 = vmul.f32 0.044715, %v1623_v57  ;;  %v1719_v63 = vmul.f32 0.5, %v1623_v57 }
 0x199   : > { %2092 = vmatmul.f32.gmra.mxu2 %v1972_v49  ;;  %v1878_v32 = vmul.f32 0.7978846, %v1846_v29 }
 0x19a   : > { %v2363_v31 = vpop.eup %2362  ;;  %v1783_v52 = vmul.f32 %v1751_v27, %v1623_v57 }
 0x19b   : > { %v2042_v5 = vpop.f32.mrf.mxu1  ;;  %v1941_v13 = vadd.f32 1.0, %v2363_v31  ;;  %2364 = vtanh.f32 %v1878_v32 }
 0x19c   : > { %v2043_v25 = vadd.f32 %v3445_v43, %v2042_v5  ;;  %v1815_v23 = vmul.f32 %v1783_v52, %v1623_v57 }
 0x19d   : > { %v1973_v6 = vmul.f32 %v1941_v13, %v1717_v60 }
 0x19e   : > { %2120 = vst.msk [vmem:[%s3462_s26 + $0x48] sm:$0xff] %vm323_vm0, %v2043_v25  ;;  %v1847_v39 = vadd.f32 %v1815_v23, %v1623_v57 }
 0x1a0   : > { %v1879_v34 = vmul.f32 0.7978846, %v1847_v39 }
 0x1a1   : > { %v2365_v14 = vpop.eup %2364  ;;  %2095 = vmatmul.f32.gmra.mxu2 %v1973_v6 }
 0x1a2   : > { %2366 = vtanh.f32 %v1879_v34  ;;  %v1942_v56 = vadd.f32 1.0, %v2365_v14 }
 0x1a3   : > { %v2045_v7 = vpop.f32.mrf.mxu1 }
 0x1a4   : > { %v2046_v15 = vadd.f32 %v3445_v43, %v2045_v7  ;;  %v1974_v8 = vmul.f32 %v1942_v56, %v1718_v10 }
 0x1a6   : > { %2121 = vst.msk [vmem:[%s3462_s26 + $0x50] sm:$0xff] %vm323_vm0, %v2046_v15 }
 0x1a8   : > { %v2367_v2 = vpop.eup %2366 }
 0x1a9   : > { %2098 = vmatmul.f32.gmra.mxu2 %v1974_v8  ;;  %v1943_v62 = vadd.f32 1.0, %v2367_v2 }
 0x1ab   : > { %v2048_v47 = vpop.f32.mrf.mxu1  ;;  %v1975_v16 = vmul.f32 %v1943_v62, %v1719_v63 }
 0x1ac   : > { %v2049_v41 = vadd.f32 %v3445_v43, %v2048_v47 }
 0x1ae   : > { %2122 = vst.msk [vmem:[%s3462_s26 + $0x58] sm:$0xff] %vm323_vm0, %v2049_v41 }
 0x1b1   : > { %2101 = vmatmul.f32.gmra.mxu2 %v1975_v16 }
 0x1b3   : > { %v2051_v54 = vpop.f32.mrf.mxu1 }
 0x1b4   : > { %v2052_v19 = vadd.f32 %v3445_v43, %v2051_v54 }
 0x1b6   : > { %2123 = vst.msk [vmem:[%s3462_s26 + $0x60] sm:$0xff] %vm323_vm0, %v2052_v19 }
 0x1bb   : > { %v2054_v40 = vpop.f32.mrf.mxu1 }
 0x1bc   : > { %v2055_v50 = vadd.f32 %v3445_v43, %v2054_v40 }
 0x1be   : > { %2124 = vst.msk [vmem:[%s3462_s26 + $0x68] sm:$0xff] %vm323_vm0, %v2055_v50 }
 0x1c3   : > { %v2057_v38 = vpop.f32.mrf.mxu1  ;;  %v2060_v11 = vpop.f32.mrf.mxu2 }
 0x1c4   : > { %v2058_v26 = vadd.f32 %v3445_v43, %v2057_v38  ;;  %v2061_v24 = vadd.f32 %v3445_v43, %v2060_v11 }
 0x1c6   : > { %2125 = vst.msk [vmem:[%s3462_s26 + $0x70] sm:$0xff] %vm323_vm0, %v2058_v26 }
 0x1c7   : > { %2126 = vst.msk [vmem:[%s3462_s26 + $0x78] sm:$0xff] %vm323_vm0, %v2061_v24 }
 0x1cb   : > { %v2063_v53 = vpop.f32.mrf.mxu2 }
 0x1cc   : > { %v2064_v9 = vadd.f32 %v3445_v43, %v2063_v53 }
 0x1ce   : > { %2127 = vst.msk [vmem:[%s3462_s26 + $0x80] sm:$0xff] %vm323_vm0, %v2064_v9 }
 0x1d3   : > { %v2066_v45 = vpop.f32.mrf.mxu2 }
 0x1d4   : > { %v2067_v20 = vadd.f32 %v3445_v43, %v2066_v45 }
 0x1d6   : > { %2128 = vst.msk [vmem:[%s3462_s26 + $0x88] sm:$0xff] %vm323_vm0, %v2067_v20 }
 0x1db   : > { %v2069_v33 = vpop.f32.mrf.mxu2 }
 0x1dc   : > { %v2070_v22 = vadd.f32 %v3445_v43, %v2069_v33 }
 0x1de   : > { %2129 = vst.msk [vmem:[%s3462_s26 + $0x90] sm:$0xff] %vm323_vm0, %v2070_v22 }
 0x1e3   : > { %v2072_v61 = vpop.f32.mrf.mxu2 }
 0x1e4   : > { %v2073_v55 = vadd.f32 %v3445_v43, %v2072_v61 }
 0x1e6   : > { %2130 = vst.msk [vmem:[%s3462_s26 + $0x98] sm:$0xff] %vm323_vm0, %v2073_v55 }
 0x1eb   : > { %v2075_v0 = vpop.f32.mrf.mxu2 }
 0x1ec   : > { %v2076_v30 = vadd.f32 %v3445_v43, %v2075_v0 }
 0x1ee   : > { %2131 = vst.msk [vmem:[%s3462_s26 + $0xa0] sm:$0xff] %vm323_vm0, %v2076_v30 }
 0x1f3   : > { %v2078_v1 = vpop.f32.mrf.mxu2 }
 0x1f4   : > { %v2079_v21 = vadd.f32 %v3445_v43, %v2078_v1 }
 0x1f6   : > { %2132 = vst.msk [vmem:[%s3462_s26 + $0xa8] sm:$0xff] %vm323_vm0, %v2079_v21 }
 0x1fb   : > { %v2081_v44 = vpop.f32.mrf.mxu2 }
 0x1fc   : > { %v2082_v17 = vadd.f32 %v3445_v43, %v2081_v44 }
 0x1fe   : > { %2133 = vst.msk [vmem:[%s3462_s26 + $0xb0] sm:$0xff] %vm323_vm0, %v2082_v17 }
 0x202   : > { %v2105_v46 = vpop.f32.mrf.mxu3 }
 0x203   : > { %v2084_v48 = vpop.f32.mrf.mxu2  ;;  %v2106_v4 = vadd.f32 %v3445_v43, %v2105_v46 }
 0x204   : > { %v2085_v3 = vadd.f32 %v3445_v43, %v2084_v48 }
 0x205   : > { %2141 = vst.msk [vmem:[%s3462_s26 + $0xf0] sm:$0xff] %vm323_vm0, %v2106_v4 }
 0x206   : > { %2134 = vst.msk [vmem:[%s3462_s26 + $0xb8] sm:$0xff] %vm323_vm0, %v2085_v3 }
 0x20a   : > { %v2108_v36 = vpop.f32.mrf.mxu3 }
 0x20b   : > { %v2109_v18 = vadd.f32 %v3445_v43, %v2108_v36 }
 0x20c   : > { %v2087_v58 = vpop.f32.mrf.mxu2 }
 0x20d   : > { %2142 = vst.msk [vmem:[%s3462_s26 + $0xf8] sm:$0xff] %vm323_vm0, %v2109_v18  ;;  %v2088_v37 = vadd.f32 %v3445_v43, %v2087_v58 }
 0x20f   : > { %2135 = vst.msk [vmem:[%s3462_s26 + $0xc0] sm:$0xff] %vm323_vm0, %v2088_v37 }
 0x214   : > { %v2090_v51 = vpop.f32.mrf.mxu2 }
 0x215   : > { %v2091_v12 = vadd.f32 %v3445_v43, %v2090_v51 }
 0x217   : > { %2136 = vst.msk [vmem:[%s3462_s26 + $0xc8] sm:$0xff] %vm323_vm0, %v2091_v12 }
 0x21c   : > { %v2093_v28 = vpop.f32.mrf.mxu2 }
 0x21d   : > { %v2094_v35 = vadd.f32 %v3445_v43, %v2093_v28 }
 0x21f   : > { %2137 = vst.msk [vmem:[%s3462_s26 + $0xd0] sm:$0xff] %vm323_vm0, %v2094_v35 }
 0x224   : > { %v2096_v59 = vpop.f32.mrf.mxu2 }
 0x225   : > { %v2097_v42 = vadd.f32 %v3445_v43, %v2096_v59 }
 0x227   : > { %2138 = vst.msk [vmem:[%s3462_s26 + $0xd8] sm:$0xff] %vm323_vm0, %v2097_v42 }
 0x22c   : > { %v2099_v57 = vpop.f32.mrf.mxu2 }
 0x22d   : > { %v2100_v49 = vadd.f32 %v3445_v43, %v2099_v57 }
 0x22f   : > { %2139 = vst.msk [vmem:[%s3462_s26 + $0xe0] sm:$0xff] %vm323_vm0, %v2100_v49 }
 0x234   : > { %v2102_v29 = vpop.f32.mrf.mxu2 }
 0x235   : > { %v2103_v27 = vadd.f32 %v3445_v43, %v2102_v29 }
 0x237   : > { %2140 = vst.msk [vmem:[%s3462_s26 + $0xe8] sm:$0xff] %vm323_vm0, %v2103_v27 }
 0x238 PF: > { %s17_s24 = sadd.s32 1, %s2396_s24  }
 0x239   : > { %p14_p4 = scmp.ge.s32.totalorder %s17_s24, 4  }
 0x23b   :  { %16 = sbr.rel (!%p14_p4) target bundleno = 1 (0x1), region = 81 }

</bundles_post_ra>
